<compile_context>
chip_gen: v7x
topology: tpu7x:2x2x1
jax: 0.10.0
libtpu: 0.0.40
codegen_flags: <defaults>
</compile_context>

<pallas_src>
import math

import jax
import jax.numpy as jnp
from jax.experimental import pallas as pl
from jax.experimental.pallas import tpu as pltpu

LOG_2PI = math.log(2.0 * math.pi)


def _round_up(n, m):
    return ((n + m - 1) // m) * m


def _dot_t(a, b):
    # a: (M, K), b: (N, K) -> (M, N), contracting on K (avoids an in-kernel transpose).
    return jax.lax.dot_general(
        a, b, (((1,), (1,)), ((), ())), preferred_element_type=jnp.float32
    )


def gmmvae_forward_kernel(
    x_ref, eps_ref,
    w1_ref, b1_ref,
    wh_ref, bh_ref,
    inv_s_ref, mu_inv_s_ref, cconst_ref,
    out_ref,
):
    lat = eps_ref.shape[-1]

    # ---- encoder hidden layer: Linear + ReLU (BN layers unused in torch forward) ----
    x = x_ref[...]
    w1 = w1_ref[...]
    h = jnp.dot(x.astype(w1.dtype), w1, preferred_element_type=jnp.float32) + b1_ref[...]
    h = jnp.maximum(h, 0.0)                                        # (TB, H), f32

    # ---- fused mu/log_var head (single matmul) + reparameterization ----
    wh = wh_ref[...]
    head = jnp.dot(h.astype(wh.dtype), wh, preferred_element_type=jnp.float32) + bh_ref[...]
    mu = head[:, :lat]
    log_var = head[:, lat:]
    z = mu + jnp.exp(0.5 * log_var) * eps_ref[...]                 # (TB, L), f32

    # ---- per-cluster Gaussian log-pdf, lane-dense over a 128-padded cluster axis ----
    # quad[b,c] = sum_d (z-mu_c)^2 / sigma_c^2, expanded as z^2/s - 2 z mu_c/s + mu_c^2/s;
    # the mu_c^2/s term (and log|s|, log(pi), L*log(2pi)) is pre-folded into cconst.
    # NOTE: the matmul expansion can lose precision vs. the direct (z-mu_c)^2 form when
    # |z| ~ |mu_c| are large; acceptable for this module's value ranges.
    quad = _dot_t(z * z, inv_s_ref[...]) - 2.0 * _dot_t(z, mu_inv_s_ref[...])  # (TB, Cp)
    out_ref[...] = jnp.exp(cconst_ref[...] - 0.5 * quad)           # (TB, Cp), unmasked store


def clustering_vae_forward(x, eps, params, *, batch_block=256,
                           compute_dtype=jnp.float32, cluster_lanes=128):
    """Fused ClusteringBasedVAE.forward; returns pzc of shape (B, n_clusters), f32."""
    w1, b1, wmu, bmu, wlv, blv, pi, mu_c, log_s = params
    B, d_in = x.shape
    hid = w1.shape[1]
    lat = wmu.shape[1]
    n_clusters = mu_c.shape[0]

    # Batch tile: as large as is useful (cap vs. the batch itself), multiple of 8 sublanes.
    # 256-row tiles of x/eps/out stay well under v7x's 64 MiB VMEM even double-buffered.
    batch_block = min(batch_block, _round_up(B, 8))
    B_pad = _round_up(B, batch_block)
    if B_pad != B:
        x = jnp.pad(x, ((0, B_pad - B), (0, 0)))
        eps = jnp.pad(eps, ((0, B_pad - B), (0, 0)))

    # Fuse the mu / log_var heads into one matmul; cast matmul weights to compute_dtype.
    w_head = jnp.concatenate([wmu, wlv], axis=1)                   # (H, 2L)
    b_head = jnp.concatenate([bmu, blv], axis=1)                   # (1, 2L)  (stays f32)
    w1_c = w1.astype(compute_dtype)
    w_head_c = w_head.astype(compute_dtype)

    # Hoist batch-invariant cluster constants out of the grid loop; pad the cluster axis
    # to a lane-dense width so the output store is unmasked. Padded clusters get
    # inv_s = 0, mu/s = 0 and a huge negative constant -> exp() == 0 (sliced off anyway).
    C_pad = _round_up(max(n_clusters, cluster_lanes), cluster_lanes)
    inv_s = jnp.exp(-log_s)                                        # (C, L)
    mu_inv_s = mu_c * inv_s                                        # (C, L)
    cconst = jnp.log(pi) - 0.5 * (
        lat * LOG_2PI + jnp.sum(log_s + mu_c * mu_c * inv_s, axis=1)[None, :]
    )                                                              # (1, C)
    inv_s_p = jnp.zeros((C_pad, lat), jnp.float32).at[:n_clusters].set(inv_s)
    mu_inv_s_p = jnp.zeros((C_pad, lat), jnp.float32).at[:n_clusters].set(mu_inv_s)
    cconst_p = jnp.full((1, C_pad), -1e30, jnp.float32).at[:, :n_clusters].set(cconst)

    grid = (B_pad // batch_block,)

    def bcast_spec(shape):
        return pl.BlockSpec(shape, lambda i: tuple(0 for _ in shape))

    out = pl.pallas_call(
        gmmvae_forward_kernel,
        out_shape=jax.ShapeDtypeStruct((B_pad, C_pad), jnp.float32),
        grid=grid,
        in_specs=[
            pl.BlockSpec((batch_block, d_in), lambda i: (i, 0)),   # x
            pl.BlockSpec((batch_block, lat), lambda i: (i, 0)),    # eps
            bcast_spec((d_in, hid)),                               # W1 (pre-transposed)
            bcast_spec((1, hid)),                                  # b1
            bcast_spec((hid, 2 * lat)),                            # [Wmu | Wlv]
            bcast_spec((1, 2 * lat)),                              # [bmu | blv]
            bcast_spec((C_pad, lat)),                              # 1 / sigma_c^2
            bcast_spec((C_pad, lat)),                              # mu_c / sigma_c^2
            bcast_spec((1, C_pad)),                                # fused cluster constant
        ],
        out_specs=pl.BlockSpec((batch_block, C_pad), lambda i: (i, 0)),
        compiler_params=pltpu.CompilerParams(
            dimension_semantics=("parallel",),
            vmem_limit_bytes=64 * 1024 * 1024,
        ),
    )(x, eps, w1_c, b1, w_head_c, b_head, inv_s_p, mu_inv_s_p, cconst_p)

    return out[:B, :n_clusters]


def init_params(key, dimensions, n_clusters):
    """Parameter init mirroring the module shapes.  Linear weights use PyTorch's default
    U(-1/sqrt(fan_in), 1/sqrt(fan_in)) and are stored pre-transposed as (in, out)."""
    d_in, hid, lat = dimensions
    ks = jax.random.split(key, 6)

    def linear(kw, kb, fan_in, fan_out):
        bound = 1.0 / math.sqrt(fan_in)
        w = jax.random.uniform(kw, (fan_in, fan_out), jnp.float32, -bound, bound)
        b = jax.random.uniform(kb, (1, fan_out), jnp.float32, -bound, bound)
        return w, b

    w1, b1 = linear(ks[0], ks[1], d_in, hid)       # encoder hidden Linear(d_in, hid)
    wmu, bmu = linear(ks[2], ks[3], hid, lat)      # GaussianSampling.mu
    wlv, blv = linear(ks[4], ks[5], hid, lat)      # GaussianSampling.log_var

    pi = jnp.ones((1, n_clusters), jnp.float32) / n_clusters       # self.pi
    mu_c = jnp.zeros((n_clusters, lat), jnp.float32)               # self.mu_c
    log_s = jnp.ones((n_clusters, lat), jnp.float32)               # self.log_sigma_c
    return (w1, b1, wmu, bmu, wlv, blv, pi, mu_c, log_s)


def reference_forward(x, eps, params, compute_dtype=jnp.float32):
    """Pure-JAX reference of the same forward (direct (z-mu_c)^2 form, like the torch code).
    compute_dtype mirrors the kernel's matmul-operand dtype for apples-to-apples checks."""
    w1, b1, wmu, bmu, wlv, blv, pi, mu_c, log_s = params
    w1c, wmuc, wlvc = (w.astype(compute_dtype) for w in (w1, wmu, wlv))
    h = jnp.maximum(
        jnp.dot(x.astype(compute_dtype), w1c, preferred_element_type=jnp.float32) + b1, 0.0)
    hc = h.astype(compute_dtype)
    mu = jnp.dot(hc, wmuc, preferred_element_type=jnp.float32) + bmu
    log_var = jnp.dot(hc, wlvc, preferred_element_type=jnp.float32) + blv
    z = mu + jnp.exp(0.5 * log_var) * eps
    diff = z[:, None, :] - mu_c[None, :, :]
    log_pdf = -0.5 * jnp.sum(
        LOG_2PI + log_s[None, :, :] + diff * diff / jnp.exp(log_s[None, :, :]), axis=2)
    return jnp.exp(jnp.log(pi) + log_pdf)


if __name__ == "__main__":
    # dimensions = [input_dim, hidden_dim, latent_dim] as in the torch module
    dimensions = [32, 16, 8]
    n_clusters = 4
    batch = 500   # deliberately not a multiple of the 256-row batch tile (exercises padding)

    key = jax.random.PRNGKey(0)
    k_x, k_eps, k_p, k_c1, k_c2 = jax.random.split(key, 5)

    x = jax.random.normal(k_x, (batch, dimensions[0]), jnp.float32)
    # reparameterization noise (torch.randn in Stochastic.reparameterize), fixed for determinism
    eps = jax.random.normal(k_eps, (batch, dimensions[-1]), jnp.float32)

    params = init_params(k_p, dimensions, n_clusters)
    # Perturb the (normally all-zero / all-one) cluster parameters so the numerical check
    # is non-degenerate across clusters; the forward math is unchanged.
    w1, b1, wmu, bmu, wlv, blv, pi, mu_c, log_s = params
    mu_c = 0.5 * jax.random.normal(k_c1, mu_c.shape, jnp.float32)
    log_s = 1.0 + 0.2 * jax.random.normal(k_c2, log_s.shape, jnp.float32)
    params = (w1, b1, wmu, bmu, wlv, blv, pi, mu_c, log_s)

    # --- f32 matmul operands: tight check against the pure-JAX reference ---
    pzc_f32 = jax.block_until_ready(
        clustering_vae_forward(x, eps, params, batch_block=256,
                               compute_dtype=jnp.float32))
    ref_f32 = reference_forward(x, eps, params)
    assert pzc_f32.shape == (batch, n_clusters)
    assert jnp.allclose(pzc_f32, ref_f32, rtol=1e-3, atol=1e-12), (
        float(jnp.max(jnp.abs(pzc_f32 - ref_f32))))

    # --- bf16 matmul operands (v6e/v7x fast path): check against a bf16-matched reference ---
    pzc_bf16 = jax.block_until_ready(
        clustering_vae_forward(x, eps, params, batch_block=256,
                               compute_dtype=jnp.bfloat16))
    ref_bf16 = reference_forward(x, eps, params, compute_dtype=jnp.bfloat16)
    assert pzc_bf16.shape == (batch, n_clusters)
    assert jnp.allclose(pzc_bf16, ref_bf16, rtol=1e-1, atol=1e-10), (
        float(jnp.max(jnp.abs(pzc_bf16 - ref_bf16))))

    # TODO(synk): elbo_loss / decoder path not exercised by forward(); not implemented here.
    print("KERNEL_OK")
</pallas_src>

<mosaic_0001>
module attributes {stable_mosaic.version = 11 : i64} {
  func.func @gmmvae_forward_kernel(%arg0: i32, %arg1: memref<256x32xf32, #tpu.memory_space<vmem>>, %arg2: memref<256x8xf32, #tpu.memory_space<vmem>>, %arg3: memref<32x16xf32, #tpu.memory_space<vmem>>, %arg4: memref<1x16xf32, #tpu.memory_space<vmem>>, %arg5: memref<16x16xf32, #tpu.memory_space<vmem>>, %arg6: memref<1x16xf32, #tpu.memory_space<vmem>>, %arg7: memref<128x8xf32, #tpu.memory_space<vmem>>, %arg8: memref<128x8xf32, #tpu.memory_space<vmem>>, %arg9: memref<1x128xf32, #tpu.memory_space<vmem>>, %arg10: memref<256x128xf32, #tpu.memory_space<vmem>>) attributes {dimension_semantics = [#tpu.dimension_semantics<parallel>], iteration_bounds = array<i64: 2>, scalar_prefetch = 0 : i64, scratch_operands = 0 : i64, tpu.core_type = #tpu.core_type<tc>, window_params = [{transform_indices = @transform_0, window_bounds = array<i64: 256, 32>}, {transform_indices = @transform_1, window_bounds = array<i64: 256, 8>}, {pipeline_mode = #tpu.pipeline_mode<synchronous>, transform_indices = @transform_2, window_bounds = array<i64: 32, 16>}, {pipeline_mode = #tpu.pipeline_mode<synchronous>, transform_indices = @transform_3, window_bounds = array<i64: 1, 16>}, {pipeline_mode = #tpu.pipeline_mode<synchronous>, transform_indices = @transform_4, window_bounds = array<i64: 16, 16>}, {pipeline_mode = #tpu.pipeline_mode<synchronous>, transform_indices = @transform_5, window_bounds = array<i64: 1, 16>}, {pipeline_mode = #tpu.pipeline_mode<synchronous>, transform_indices = @transform_6, window_bounds = array<i64: 128, 8>}, {pipeline_mode = #tpu.pipeline_mode<synchronous>, transform_indices = @transform_7, window_bounds = array<i64: 128, 8>}, {pipeline_mode = #tpu.pipeline_mode<synchronous>, transform_indices = @transform_8, window_bounds = array<i64: 1, 128>}, {transform_indices = @transform_9, window_bounds = array<i64: 256, 128>}]} {
    %c0 = arith.constant 0 : index
    %c0_0 = arith.constant 0 : index
    %0 = vector.load %arg1[%c0, %c0_0] : memref<256x32xf32, #tpu.memory_space<vmem>>, vector<256x32xf32>
    %c0_1 = arith.constant 0 : index
    %c0_2 = arith.constant 0 : index
    %1 = vector.load %arg3[%c0_1, %c0_2] : memref<32x16xf32, #tpu.memory_space<vmem>>, vector<32x16xf32>
    %cst = arith.constant dense<0.000000e+00> : vector<256x16xf32>
    %2 = tpu.matmul %0, %1, %cst {dimension_numbers = #tpu.dot_dimension_numbers<[1], [0], [0], [1], [0, 0, 1, 1], [], []>} : vector<256x32xf32>, vector<32x16xf32>, vector<256x16xf32> -> vector<256x16xf32>
    %c0_3 = arith.constant 0 : index
    %c0_4 = arith.constant 0 : index
    %3 = vector.load %arg4[%c0_3, %c0_4] : memref<1x16xf32, #tpu.memory_space<vmem>>, vector<1x16xf32>
    %4 = vector.broadcast %3 : vector<1x16xf32> to vector<256x16xf32>
    %5 = arith.addf %2, %4 : vector<256x16xf32>
    %cst_5 = arith.constant 0.000000e+00 : f32
    %6 = vector.broadcast %cst_5 : f32 to vector<256x16xf32>
    %7 = arith.maximumf %5, %6 : vector<256x16xf32>
    %c0_6 = arith.constant 0 : index
    %c0_7 = arith.constant 0 : index
    %8 = vector.load %arg5[%c0_6, %c0_7] : memref<16x16xf32, #tpu.memory_space<vmem>>, vector<16x16xf32>
    %cst_8 = arith.constant dense<0.000000e+00> : vector<256x16xf32>
    %9 = tpu.matmul %7, %8, %cst_8 {dimension_numbers = #tpu.dot_dimension_numbers<[1], [0], [0], [1], [0, 0, 1, 1], [], []>} : vector<256x16xf32>, vector<16x16xf32>, vector<256x16xf32> -> vector<256x16xf32>
    %c0_9 = arith.constant 0 : index
    %c0_10 = arith.constant 0 : index
    %10 = vector.load %arg6[%c0_9, %c0_10] : memref<1x16xf32, #tpu.memory_space<vmem>>, vector<1x16xf32>
    %11 = vector.broadcast %10 : vector<1x16xf32> to vector<256x16xf32>
    %12 = arith.addf %9, %11 : vector<256x16xf32>
    %13 = vector.extract_strided_slice %12 {offsets = [0, 0], sizes = [256, 8], strides = [1, 1]} : vector<256x16xf32> to vector<256x8xf32>
    %14 = vector.extract_strided_slice %12 {offsets = [0, 8], sizes = [256, 8], strides = [1, 1]} : vector<256x16xf32> to vector<256x8xf32>
    %cst_11 = arith.constant 5.000000e-01 : f32
    %15 = vector.broadcast %cst_11 : f32 to vector<256x8xf32>
    %16 = arith.mulf %15, %14 : vector<256x8xf32>
    %17 = math.exp %16 : vector<256x8xf32>
    %c0_12 = arith.constant 0 : index
    %c0_13 = arith.constant 0 : index
    %18 = vector.load %arg2[%c0_12, %c0_13] : memref<256x8xf32, #tpu.memory_space<vmem>>, vector<256x8xf32>
    %19 = arith.mulf %17, %18 : vector<256x8xf32>
    %20 = arith.addf %13, %19 : vector<256x8xf32>
    %21 = arith.mulf %20, %20 : vector<256x8xf32>
    %c0_14 = arith.constant 0 : index
    %c0_15 = arith.constant 0 : index
    %22 = vector.load %arg7[%c0_14, %c0_15] : memref<128x8xf32, #tpu.memory_space<vmem>>, vector<128x8xf32>
    %cst_16 = arith.constant dense<0.000000e+00> : vector<256x128xf32>
    %23 = tpu.matmul %21, %22, %cst_16 {dimension_numbers = #tpu.dot_dimension_numbers<[1], [1], [0], [0], [0, 0, 1, 0], [], []>} : vector<256x8xf32>, vector<128x8xf32>, vector<256x128xf32> -> vector<256x128xf32>
    %c0_17 = arith.constant 0 : index
    %c0_18 = arith.constant 0 : index
    %24 = vector.load %arg8[%c0_17, %c0_18] : memref<128x8xf32, #tpu.memory_space<vmem>>, vector<128x8xf32>
    %cst_19 = arith.constant dense<0.000000e+00> : vector<256x128xf32>
    %25 = tpu.matmul %20, %24, %cst_19 {dimension_numbers = #tpu.dot_dimension_numbers<[1], [1], [0], [0], [0, 0, 1, 0], [], []>} : vector<256x8xf32>, vector<128x8xf32>, vector<256x128xf32> -> vector<256x128xf32>
    %cst_20 = arith.constant 2.000000e+00 : f32
    %26 = vector.broadcast %cst_20 : f32 to vector<256x128xf32>
    %27 = arith.mulf %26, %25 : vector<256x128xf32>
    %28 = arith.subf %23, %27 : vector<256x128xf32>
    %c0_21 = arith.constant 0 : index
    %c0_22 = arith.constant 0 : index
    %29 = vector.load %arg9[%c0_21, %c0_22] : memref<1x128xf32, #tpu.memory_space<vmem>>, vector<1x128xf32>
    %cst_23 = arith.constant 5.000000e-01 : f32
    %30 = vector.broadcast %cst_23 : f32 to vector<256x128xf32>
    %31 = arith.mulf %30, %28 : vector<256x128xf32>
    %32 = vector.broadcast %29 : vector<1x128xf32> to vector<256x128xf32>
    %33 = arith.subf %32, %31 : vector<256x128xf32>
    %34 = math.exp %33 : vector<256x128xf32>
    %c0_24 = arith.constant 0 : index
    %c0_25 = arith.constant 0 : index
    %35 = vector.load %arg10[%c0_24, %c0_25] : memref<256x128xf32, #tpu.memory_space<vmem>>, vector<256x128xf32>
    tpu.vector_store %arg10[%c0_24, %c0_25], %34 {strides = array<i32>} : memref<256x128xf32, #tpu.memory_space<vmem>>, vector<256x128xf32>,
    return
  }
  func.func @transform_0(%arg0: i32) -> (i32, i32) {
    %c0_i32 = arith.constant 0 : i32
    %c0_i32_0 = arith.constant 0 : i32
    return %arg0, %c0_i32 : i32, i32
  }
  func.func @transform_1(%arg0: i32) -> (i32, i32) {
    %c0_i32 = arith.constant 0 : i32
    %c0_i32_0 = arith.constant 0 : i32
    return %arg0, %c0_i32 : i32, i32
  }
  func.func @transform_2(%arg0: i32) -> (i32, i32) {
    %c0_i32 = arith.constant 0 : i32
    %c0_i32_0 = arith.constant 0 : i32
    %c0_i32_1 = arith.constant 0 : i32
    return %c0_i32, %c0_i32_0 : i32, i32
  }
  func.func @transform_3(%arg0: i32) -> (i32, i32) {
    %c0_i32 = arith.constant 0 : i32
    %c0_i32_0 = arith.constant 0 : i32
    %c0_i32_1 = arith.constant 0 : i32
    return %c0_i32, %c0_i32_0 : i32, i32
  }
  func.func @transform_4(%arg0: i32) -> (i32, i32) {
    %c0_i32 = arith.constant 0 : i32
    %c0_i32_0 = arith.constant 0 : i32
    %c0_i32_1 = arith.constant 0 : i32
    return %c0_i32, %c0_i32_0 : i32, i32
  }
  func.func @transform_5(%arg0: i32) -> (i32, i32) {
    %c0_i32 = arith.constant 0 : i32
    %c0_i32_0 = arith.constant 0 : i32
    %c0_i32_1 = arith.constant 0 : i32
    return %c0_i32, %c0_i32_0 : i32, i32
  }
  func.func @transform_6(%arg0: i32) -> (i32, i32) {
    %c0_i32 = arith.constant 0 : i32
    %c0_i32_0 = arith.constant 0 : i32
    %c0_i32_1 = arith.constant 0 : i32
    return %c0_i32, %c0_i32_0 : i32, i32
  }
  func.func @transform_7(%arg0: i32) -> (i32, i32) {
    %c0_i32 = arith.constant 0 : i32
    %c0_i32_0 = arith.constant 0 : i32
    %c0_i32_1 = arith.constant 0 : i32
    return %c0_i32, %c0_i32_0 : i32, i32
  }
  func.func @transform_8(%arg0: i32) -> (i32, i32) {
    %c0_i32 = arith.constant 0 : i32
    %c0_i32_0 = arith.constant 0 : i32
    %c0_i32_1 = arith.constant 0 : i32
    return %c0_i32, %c0_i32_0 : i32, i32
  }
  func.func @transform_9(%arg0: i32) -> (i32, i32) {
    %c0_i32 = arith.constant 0 : i32
    %c0_i32_0 = arith.constant 0 : i32
    return %arg0, %c0_i32 : i32, i32
  }
}

</mosaic_0001>

<bundles_post_ra>
// kernel: tpu_custom_call.1
= control target key start
LH: loop header
LB: loop body
LE: loop exit
PB: predicated region body
PF: predicated region fallthrough
CT: control target
= control target key end

     0   :  { %s5341_s0 = inlined_call_operand.hbm [shape: f32[512,32], index: 0, kind: input, shape index: {}]   ;;  %s5342_s1 = inlined_call_operand.hbm [shape: f32[512,8], index: 1, kind: input, shape index: {}]   ;;  %s5343_s2 = inlined_call_operand.hbm [shape: f32[32,16], index: 2, kind: input, shape index: {}]   ;;  %s5344_s3 = inlined_call_operand.hbm [shape: f32[1,16], index: 3, kind: input, shape index: {}]   ;;  %s5345_s4 = inlined_call_operand.hbm [shape: f32[16,16], index: 4, kind: input, shape index: {}]   ;;  %s5346_s5 = inlined_call_operand.hbm [shape: f32[1,16], index: 5, kind: input, shape index: {}]   ;;  %s5347_s6 = inlined_call_operand.hbm [shape: f32[128,8], index: 6, kind: input, shape index: {}]   ;;  %s5348_s7 = inlined_call_operand.hbm [shape: f32[128,8], index: 7, kind: input, shape index: {}]   ;;  %s5349_s8 = inlined_call_operand.hbm [shape: f32[1,128], index: 8, kind: input, shape index: {}]   ;;  %s5350_s9 = inlined_call_operand.hbm [shape: f32[512,128], index: 9, kind: output, shape index: {}]  }
   0x1   :  { %5359 = sst [smem:[#allocation25_spill]] %s5341_s0 }
   0x2   :  { %5360 = sst [smem:[#allocation26_spill]] %s5343_s2 }
   0x3   :  { %5361 = sst [smem:[#allocation27_spill]] %s5344_s3 }
   0x4   :  { %5362 = sst [smem:[#allocation28_spill]] %s5345_s4 }
   0x5   :  { %5363 = sst [smem:[#allocation29_spill]] %s5346_s5 }
   0x6   :  { %5364 = sst [smem:[#allocation30_spill]] %s5347_s6 }
   0x7   :  { %5365 = sst [smem:[#allocation31_spill]] %s5348_s7 }
   0x8   :  { %5366 = sst [smem:[#allocation32_spill]] %s5350_s9 }
   0x9   :  { %14 = vsyncpa [#allocation3], 0 }
   0xa   :  { %16 = vsyncpa [#allocation3 + $0x1], 0 }
   0xb   :  { %17 = vsyncpa [#allocation6], 0 }
   0xc   :  { %19 = vsyncpa [#allocation6 + $0x1], 0 }
   0xd   :  { %20 = vsyncpa [#allocation9], 0 }
   0xe   :  { %21 = vsyncpa [#allocation12], 0 }
   0xf   :  { %22 = vsyncpa [#allocation15], 0 }
  0x10   :  { %23 = vsyncpa [#allocation4], 0 }
  0x11   :  { %25 = vsyncpa [#allocation4 + $0x1], 0  ;;  %s4279_s30 = smov 0   ;;  %s4281_s10 = smov 0  }
  0x12   :  { %s4283_s11 = smov 0   ;;  %s4285_s12 = smov 0  }
  0x13 LB: > { %s4214_s13 = smov [#allocation7]   ;;  %s4300_s15 = sadd.s32 4294967295, %s4212_s12   ;;  %s4212_s12 = sphi %s4285_s12, %s5402_s12   ;;  %s4208_s11 = sphi %s4283_s11, %s5401_s11   ;;  %s4204_s10 = sphi %s4281_s10, %s5400_s10   ;;  %s4200_s30 = sphi %s4279_s30, %s5399_s30  }
  0x14   : > { %s273_s14 = sshll.u32 %s4214_s13, 4  ;;  %p2876_p0 = scmp.ge.s32.totalorder %s4212_s12, 1  ;;  %s4305_s14 = int_to_ptr.vmem [resolvable:$true] %s273_s14 }
  0x15   : > { %p5354_p1 = scmp.eq.s32.totalorder %s4300_s15, 0  ;;  %p261_p2 = scmp.lt.s32.totalorder %s4212_s12, 3 }
  0x16   : > { %s4215_s17 = smov [#allocation8]   ;;  %s4216_s20 = smov [#allocation11]  }
  0x17   : > { %p4307_p3 = pnand %p2876_p0, %p261_p2  ;;  %s287_s18 = sshll.u32 %s4215_s17, 4  ;;  %s4320_s18 = int_to_ptr.vmem [resolvable:$true] %s287_s18 }
  0x18   : > { %s311_s21 = sshll.u32 %s4216_s20, 4  ;;  %s5369_s2 = sld [smem:[#allocation26_spill]]  ;;  %s4322_s21 = int_to_ptr.vmem [resolvable:$true] %s311_s21 }
  0x19   : > { %s5367_s16 = scalar_select %p4307_p3, 1, 0 }
  0x1a   : > { %p3649_p5 = pneg %p4307_p3 }
  0x1c   : > { %p4316_p6 = pnand %p3649_p5, %p5354_p1 }
  0x1e   : > { %s3870_s24 = scalar_lea.hbm %s5369_s2, 512  ;;  %p4332_p8 = pneg %p4316_p6 }
  0x1f   : > { %p3871_p7 = scmp.ne.s32.totalorder %s5369_s2, %s3870_s24  ;;  %p3877_p11 = scmp.lt.u32.totalorder %s3870_s24, %s5369_s2 }
  0x21   : > { %p3873_p9 = pnand %p4332_p8, %p3871_p7 }
  0x23   : > { %p3874_p10 = pneg %p3873_p9 }
  0x25   : > { %p3879_p12 = pnand %p3877_p11, %p3874_p10 }
  0x27   : > { %3882 = shalt.err (!%p3879_p12)
}
  0x28   : > { %s3883_s13 = scalar_lea.vmem %s4305_s14, 512  ;;  %p3891_p5 = scmp.lt.s32.totalorder %s4305_s14, %s4305_s14 }
  0x29   : > { %p3884_p13 = scmp.ne.s32.totalorder %s4305_s14, %s3883_s13  ;;  %p3892_p4 = scmp.lt.s32.totalorder %s3883_s13, %s3883_s13 }
  0x2b   : > { %p3886_p0 = pnand %p3884_p13, %p4332_p8  ;;  %p3893_p7 = por %p3892_p4, %p3891_p5 }
  0x2d   : > { %p3887_p2 = pneg %p3886_p0 }
  0x2f   : > { %p3894_p9 = pnand %p3893_p7, %p3887_p2 }
  0x31   : > { %3897 = shalt.err (!%p3894_p9)
}
  0x32   : > { %s5352_s17 = smov 128   ;;  %s5356_s20 = smov 8  }
  0x33   : > { %3652 = dma.hbm_to_vmem [thread:$0]  (!%p4316_p6), %s5369_s2, 512, %s4305_s14, [#allocation6], %s5352_s17, %s5352_s17, %s5356_s20  }
  0x34   : > { %s5371_s3 = sld [smem:[#allocation27_spill]] }
  0x3a   : > { %s3898_s26 = scalar_lea.hbm %s5371_s3, 16 }
  0x3b   : > { %p3899_p4 = scmp.ne.s32.totalorder %s5371_s3, %s3898_s26  ;;  %p3905_p12 = scmp.lt.u32.totalorder %s3898_s26, %s5371_s3 }
  0x3d   : > { %p3901_p10 = pnand %p3899_p4, %p4332_p8 }
  0x3f   : > { %p3902_p11 = pneg %p3901_p10 }
  0x41   : > { %p3907_p13 = pnand %p3905_p12, %p3902_p11 }
  0x43   : > { %3910 = shalt.err (!%p3907_p13)
}
  0x44   : > { %s3911_s14 = scalar_lea.vmem %s4320_s18, 16  ;;  %s3918_s22 = scalar_lea.vmem %s4320_s18, 32 }
  0x45   : > { %p3912_p0 = scmp.ne.s32.totalorder %s4320_s18, %s3911_s14  ;;  %p3919_p7 = scmp.lt.s32.totalorder %s4320_s18, %s4320_s18 }
  0x46   : > { %p3920_p9 = scmp.lt.s32.totalorder %s3918_s22, %s3911_s14 }
  0x47   : > { %p3914_p2 = pnand %p3912_p0, %p4332_p8 }
  0x48   : > { %p3921_p4 = por %p3920_p9, %p3919_p7 }
  0x49   : > { %p3915_p5 = pneg %p3914_p2 }
  0x4b   : > { %p3922_p10 = pnand %p3921_p4, %p3915_p5 }
  0x4d   : > { %3925 = shalt.err (!%p3922_p10)
}
  0x4e   : > { %3655 = dma.hbm_to_vmem [thread:$0]  (!%p4316_p6), %s5371_s3, 16, %s4320_s18, [#allocation9]  }
  0x4f   : > { %s5372_s5 = sld [smem:[#allocation29_spill]] }
  0x55   : > { %s3926_s26 = scalar_lea.hbm %s5372_s5, 16 }
  0x56   : > { %p3927_p11 = scmp.ne.s32.totalorder %s5372_s5, %s3926_s26  ;;  %p3933_p0 = scmp.lt.u32.totalorder %s3926_s26, %s5372_s5 }
  0x58   : > { %p3929_p12 = pnand %p3927_p11, %p4332_p8 }
  0x5a   : > { %p3930_p13 = pneg %p3929_p12 }
  0x5c   : > { %p3935_p2 = pnand %p3933_p0, %p3930_p13 }
  0x5e   : > { %3938 = shalt.err (!%p3935_p2)
}
  0x5f   : > { %s3939_s18 = scalar_lea.vmem %s4322_s21, 16  ;;  %s3946_s22 = scalar_lea.vmem %s4322_s21, 32 }
  0x60   : > { %p3940_p5 = scmp.ne.s32.totalorder %s4322_s21, %s3939_s18  ;;  %p3947_p4 = scmp.lt.s32.totalorder %s4322_s21, %s4322_s21 }
  0x61   : > { %p3948_p10 = scmp.lt.s32.totalorder %s3946_s22, %s3939_s18 }
  0x62   : > { %p3942_p7 = pnand %p3940_p5, %p4332_p8 }
  0x63   : > { %p3949_p11 = por %p3948_p10, %p3947_p4 }
  0x64   : > { %p3943_p9 = pneg %p3942_p7 }
  0x66   : > { %p3950_p12 = pnand %p3949_p11, %p3943_p9 }
  0x68   : > { %3953 = shalt.err (!%p3950_p12)
}
  0x69   : > { %3661 = dma.hbm_to_vmem [thread:$0]  (!%p4316_p6), %s5372_s5, 16, %s4322_s21, [#allocation12]  }
  0x6a   : > { %s4219_s24 = smov [#allocation14]   ;;  %s4220_s26 = smov [#allocation10]  }
  0x6b   : > { %s334_s25 = sshll.u32 %s4219_s24, 4  ;;  %s297_s28 = sshll.u32 %s4220_s26, 4  ;;  %s335_s25 = int_to_ptr.vmem [resolvable:$true] %s334_s25  ;;  %s298_s28 = int_to_ptr.vmem [resolvable:$true] %s297_s28 }
  0x6c   : > { %s5373_s7 = sld [smem:[#allocation31_spill]] }
  0x72   : > { %s3954_s14 = scalar_lea.hbm %s5373_s7, 2048 }
  0x73   : > { %p3955_p13 = scmp.ne.s32.totalorder %s5373_s7, %s3954_s14  ;;  %p3961_p5 = scmp.lt.u32.totalorder %s3954_s14, %s5373_s7 }
  0x75   : > { %p3957_p0 = pnand %p3955_p13, %p4332_p8 }
  0x77   : > { %p3958_p2 = pneg %p3957_p0 }
  0x79   : > { %p3963_p7 = pnand %p3961_p5, %p3958_p2 }
  0x7b   : > { %3966 = shalt.err (!%p3963_p7)
}
  0x7c   : > { %s3967_s21 = scalar_lea.vmem %s335_s25, 2048  ;;  %p3975_p11 = scmp.lt.s32.totalorder %s335_s25, %s335_s25 }
  0x7d   : > { %p3968_p9 = scmp.ne.s32.totalorder %s335_s25, %s3967_s21  ;;  %p3976_p12 = scmp.lt.s32.totalorder %s3967_s21, %s3967_s21 }
  0x7f   : > { %p3970_p4 = pnand %p3968_p9, %p4332_p8  ;;  %p3977_p1 = por %p3976_p12, %p3975_p11 }
  0x81   : > { %p3971_p10 = pneg %p3970_p4 }
  0x83   : > { %p3978_p3 = pnand %p3977_p1, %p3971_p10 }
  0x85   : > { %3981 = shalt.err (!%p3978_p3)
}
  0x86   : > { %s5374_s23 = smov 128   ;;  %s5375_s4 = sld [smem:[#allocation28_spill]] }
  0x87   : > { %3667 = dma.hbm_to_vmem [thread:$0]  (!%p4316_p6), %s5373_s7, 2048, %s335_s25, [#allocation15], %s5374_s23, %s5374_s23, %s5356_s20  }
  0x8c   : > { %s3982_s13 = scalar_lea.hbm %s5375_s4, 256 }
  0x8d   : > { %p3983_p1 = scmp.ne.s32.totalorder %s5375_s4, %s3982_s13  ;;  %p3989_p0 = scmp.lt.u32.totalorder %s3982_s13, %s5375_s4 }
  0x8f   : > { %p3985_p3 = pnand %p3983_p1, %p4332_p8 }
  0x91   : > { %p3986_p13 = pneg %p3985_p3 }
  0x93   : > { %p3991_p2 = pnand %p3989_p0, %p3986_p13 }
  0x95   : > { %3994 = shalt.err (!%p3991_p2)
}
  0x96   : > { %s3995_s21 = scalar_lea.vmem %s298_s28, 256  ;;  %p4003_p4 = scmp.lt.s32.totalorder %s298_s28, %s298_s28 }
  0x97   : > { %p3996_p5 = scmp.ne.s32.totalorder %s298_s28, %s3995_s21  ;;  %p4004_p10 = scmp.lt.s32.totalorder %s3995_s21, %s3995_s21 }
  0x99   : > { %p3998_p7 = pnand %p3996_p5, %p4332_p8  ;;  %p4005_p11 = por %p4004_p10, %p4003_p4 }
  0x9b   : > { %p3999_p9 = pneg %p3998_p7 }
  0x9d   : > { %p4006_p12 = pnand %p4005_p11, %p3999_p9 }
  0x9f   : > { %4009 = shalt.err (!%p4006_p12)
}
  0xa0   : > { %3658 = dma.hbm_to_vmem [thread:$0]  (!%p4316_p6), %s5375_s4, 256, %s298_s28, [#allocation9], %s5374_s23, %s5374_s23, %s5356_s20  }
  0xa1   : > { %s4221_s24 = smov [#allocation13]   ;;  %s4222_s29 = smov [#allocation16]  }
  0xa2   : > { %s321_s26 = sshll.u32 %s4221_s24, 4  ;;  %s348_s13 = sshll.u32 %s4222_s29, 4  ;;  %s322_s26 = int_to_ptr.vmem [resolvable:$true] %s321_s26  ;;  %s349_s13 = int_to_ptr.vmem [resolvable:$true] %s348_s13 }
  0xa3   : > { %s5376_s6 = sld [smem:[#allocation30_spill]] }
  0xa9   : > { %s4010_s22 = scalar_lea.hbm %s5376_s6, 2048 }
  0xaa   : > { %p4011_p1 = scmp.ne.s32.totalorder %s5376_s6, %s4010_s22  ;;  %p4017_p0 = scmp.lt.u32.totalorder %s4010_s22, %s5376_s6 }
  0xac   : > { %p4013_p3 = pnand %p4011_p1, %p4332_p8 }
  0xae   : > { %p4014_p13 = pneg %p4013_p3 }
  0xb0   : > { %p4019_p2 = pnand %p4017_p0, %p4014_p13 }
  0xb2   : > { %4022 = shalt.err (!%p4019_p2)
}
  0xb3   : > { %s4023_s28 = scalar_lea.vmem %s322_s26, 2048  ;;  %p4031_p4 = scmp.lt.s32.totalorder %s322_s26, %s322_s26 }
  0xb4   : > { %p4024_p5 = scmp.ne.s32.totalorder %s322_s26, %s4023_s28  ;;  %p4032_p10 = scmp.lt.s32.totalorder %s4023_s28, %s4023_s28 }
  0xb6   : > { %p4026_p7 = pnand %p4024_p5, %p4332_p8  ;;  %p4033_p11 = por %p4032_p10, %p4031_p4 }
  0xb8   : > { %p4027_p9 = pneg %p4026_p7 }
  0xba   : > { %p4034_p12 = pnand %p4033_p11, %p4027_p9 }
  0xbc   : > { %4037 = shalt.err (!%p4034_p12)
}
  0xbd   : > { %3664 = dma.hbm_to_vmem [thread:$0]  (!%p4316_p6), %s5376_s6, 2048, %s322_s26, [#allocation12], %s5374_s23, %s5374_s23, %s5356_s20  }
  0xbe   : > { %s4038_s14 = scalar_lea.hbm %s5349_s8, 16 }
  0xbf   : > { %p4039_p1 = scmp.ne.s32.totalorder %s5349_s8, %s4038_s14  ;;  %p4045_p0 = scmp.lt.u32.totalorder %s4038_s14, %s5349_s8 }
  0xc1   : > { %p4041_p3 = pnand %p4039_p1, %p4332_p8 }
  0xc3   : > { %p4042_p13 = pneg %p4041_p3 }
  0xc5   : > { %p4047_p2 = pnand %p4045_p0, %p4042_p13 }
  0xc7   : > { %4050 = shalt.err (!%p4047_p2)
}
  0xc8   : > { %s4051_s25 = scalar_lea.vmem %s349_s13, 16  ;;  %s4058_s26 = scalar_lea.vmem %s349_s13, 32 }
  0xc9   : > { %p4052_p5 = scmp.ne.s32.totalorder %s349_s13, %s4051_s25  ;;  %p4059_p4 = scmp.lt.s32.totalorder %s349_s13, %s349_s13 }
  0xca   : > { %p4060_p10 = scmp.lt.s32.totalorder %s4058_s26, %s4051_s25 }
  0xcb   : > { %p4054_p7 = pnand %p4052_p5, %p4332_p8 }
  0xcc   : > { %p4061_p11 = por %p4060_p10, %p4059_p4 }
  0xcd   : > { %p4055_p9 = pneg %p4054_p7 }
  0xcf   : > { %p4062_p12 = pnand %p4061_p11, %p4055_p9 }
  0xd1   : > { %4065 = shalt.err (!%p4062_p12)
}
  0xd2   : > { %3670 = dma.hbm_to_vmem [thread:$0]  (!%p4316_p6), %s5349_s8, 16, %s349_s13, [#allocation15]  }
  0xd3   : > { %s2875_s27 = sadd.s32 4294967294, %s4212_s12   ;;  %s4487_s19 = sadd.s32 1, %s4212_s12  }
  0xd4   : > { %s38_s17 = sadd.s32 1, %s4208_s11  ;;  %s35_s24 = ssub.s32 %s4212_s12, %s4487_s19 }
  0xd5   : > { %p45_p8 = scmp.ne.s32.totalorder %s4208_s11, %s4204_s10  ;;  %p36_p1 = scmp.eq.s32.totalorder %s35_s24, 0 }
  0xd6   : > { %p46_p3 = scmp.eq.s32.totalorder %s4212_s12, 0  ;;  %p51_p13 = scmp.ne.s32.totalorder %s4204_s10, %s4200_s30 }
  0xd7   : > { %p248_p0 = scmp.eq.s32.totalorder %s4300_s15, 1  ;;  %p5377_p5 = scmp.eq.s32.totalorder %s4300_s15, 0 }
  0xd8   : > { %s4499_s29 = scalar_select %p36_p1, %s4208_s11, %s38_s17  }
  0xd9   : > { %p47_p2 = por %p46_p3, %p45_p8  ;;  %p4503_p7 = por %p5377_p5, %p51_p13 }
  0xda   : > { %p4507_p6 = por %p248_p0, %p45_p8  ;;  %p254_p9 = scmp.eq.s32.totalorder %s2875_s27, 1 }
  0xdb   : > { %p3689_p4 = scmp.lt.s32.totalorder %s4212_s12, 2  ;;  %s359_s18 = sand.u32 1, %s4208_s11  }
  0xdc   : > { %s5379_s13 = scalar_select %p4507_p6, 1, 0 }
  0xdd   : > { %p4513_p10 = por %p254_p9, %p51_p13  ;;  %s4517_s9 = sshll.u32 %s359_s18, 8 }
  0xde   : > { %s3070_s21 = sshll.u32 %s4212_s12, 12  ;;  %s5381_s0 = sld [smem:[#allocation25_spill]] }
  0xdf   : > { %s5380_s22 = scalar_select %p4513_p10, 1, 0 }
  0xe0   : > { %s363_s2 = scalar_lea.vmem [#allocation2], %s4517_s9  ;;  %p4526_p11 = pnand %p3689_p4, %p47_p2 }
  0xe1   : > { %s370_s27 = sshll.u32 %s363_s2, 4  ;;  %s4535_s25 = scalar_lea.hbm %s5342_s1, %s3070_s21  ;;  %s4530_s27 = int_to_ptr.vmem [resolvable:$true] %s370_s27 }
  0xe2   : > { %s4537_s26 = scalar_lea.sflag [#allocation3], %s359_s18  ;;  %p4068_p8 = pneg %p4526_p11 }
  0xe4   : > { %s4523_s28 = scalar_lea.hbm %s5381_s0, %s3070_s21  ;;  %s4071_s5 = scalar_lea.hbm %s5381_s0, 8192 }
  0xe5   : > { %s4066_s3 = scalar_lea.hbm %s4523_s28, 4096  ;;  %p4072_p13 = scmp.lt.u32.totalorder %s4523_s28, %s5381_s0 }
  0xe6   : > { %p4067_p12 = scmp.ne.s32.totalorder %s4523_s28, %s4066_s3  ;;  %p4073_p0 = scmp.lt.u32.totalorder %s4071_s5, %s4066_s3 }
  0xe7   : > { %p4075_p5 = scmp.lt.u32.totalorder %s4066_s3, %s4523_s28 }
  0xe8   : > { %p4069_p1 = pnand %p4068_p8, %p4067_p12  ;;  %p4074_p2 = por %p4073_p0, %p4072_p13 }
  0xea   : > { %p4070_p3 = pneg %p4069_p1  ;;  %p4076_p9 = por %p4075_p5, %p4074_p2 }
  0xec   : > { %p4077_p4 = pnand %p4076_p9, %p4070_p3 }
  0xee   : > { %4080 = shalt.err (!%p4077_p4)
}
  0xef   : > { %s4081_s20 = scalar_lea.vmem %s4530_s27, 4096  ;;  %s4223_s4 = smov [#allocation2]  }
  0xf0   : > { %p4082_p12 = scmp.ne.s32.totalorder %s4530_s27, %s4081_s20  ;;  %s4086_s18 = sshll.u32 %s4223_s4, 4  ;;  %s4087_s18 = int_to_ptr.vmem [resolvable:$false] %s4086_s18 }
  0xf1   : > { %s4088_s6 = scalar_lea.vmem %s4087_s18, 8192  ;;  %p4089_p6 = scmp.lt.s32.totalorder %s4530_s27, %s4087_s18 }
  0xf2   : > { %p4084_p1 = pnand %p4082_p12, %p4068_p8  ;;  %p4090_p13 = scmp.lt.s32.totalorder %s4088_s6, %s4081_s20 }
  0xf4   : > { %p4085_p10 = pneg %p4084_p1  ;;  %p4091_p0 = por %p4090_p13, %p4089_p6 }
  0xf6   : > { %p4092_p2 = pnand %p4091_p0, %p4085_p10 }
  0xf8   : > { %4095 = shalt.err (!%p4092_p2)
}
  0xf9   : > { %s5383_s3 = smov 8   ;;  %s384_s5 = scalar_lea.vmem [#allocation5], %s4517_s9 }
  0xfa   : > { %3674 = dma.hbm_to_vmem [thread:$0]  (!%p4526_p11), %s4523_s28, 4096, %s4530_s27, %s4537_s26, %s5374_s23, %s5374_s23, %s5383_s3  }
  0xfb   : > { %s391_s7 = sshll.u32 %s384_s5, 4  ;;  %s380_s21 = sand.u32 1, %s4212_s12   ;;  %s4570_s7 = int_to_ptr.vmem [resolvable:$true] %s391_s7 }
  0xfc   : > { %s4572_s24 = scalar_lea.sflag [#allocation6], %s380_s21  ;;  %s4096_s2 = scalar_lea.hbm %s4535_s25, 4096 }
  0xfd   : > { %p4097_p6 = scmp.ne.s32.totalorder %s4535_s25, %s4096_s2  ;;  %s4101_s18 = scalar_lea.hbm %s5342_s1, 8192 }
  0xfe   : > { %p4102_p5 = scmp.lt.u32.totalorder %s4535_s25, %s5342_s1  ;;  %p4103_p9 = scmp.lt.u32.totalorder %s4101_s18, %s4096_s2 }
  0xff   : > { %p4099_p10 = pnand %p4097_p6, %p4068_p8  ;;  %p4105_p12 = scmp.lt.u32.totalorder %s4096_s2, %s4535_s25 }
 0x100   : > { %p4104_p4 = por %p4103_p9, %p4102_p5 }
 0x101   : > { %p4100_p3 = pneg %p4099_p10 }
 0x102   : > { %p4106_p1 = por %p4105_p12, %p4104_p4 }
 0x104   : > { %p4107_p13 = pnand %p4106_p1, %p4100_p3 }
 0x106   : > { %4110 = shalt.err (!%p4107_p13)
}
 0x107   : > { %s4111_s9 = scalar_lea.vmem %s4570_s7, 4096  ;;  %s4224_s28 = smov [#allocation5]  }
 0x108   : > { %p4112_p0 = scmp.ne.s32.totalorder %s4570_s7, %s4111_s9  ;;  %s4116_s27 = sshll.u32 %s4224_s28, 4  ;;  %s4117_s27 = int_to_ptr.vmem [resolvable:$false] %s4116_s27 }
 0x109   : > { %s4118_s0 = scalar_lea.vmem %s4117_s27, 8192  ;;  %p4119_p10 = scmp.lt.s32.totalorder %s4570_s7, %s4117_s27 }
 0x10a   : > { %p4114_p2 = pnand %p4112_p0, %p4068_p8  ;;  %p4120_p5 = scmp.lt.s32.totalorder %s4118_s0, %s4111_s9 }
 0x10c   : > { %p4115_p6 = pneg %p4114_p2  ;;  %p4121_p9 = por %p4120_p5, %p4119_p10 }
 0x10e   : > { %p4122_p4 = pnand %p4121_p9, %p4115_p6 }
 0x110   : > { %4125 = shalt.err (!%p4122_p4)
}
 0x111   : > { %3677 = dma.hbm_to_vmem [thread:$0]  (!%p4526_p11), %s4535_s25, 4096, %s4570_s7, %s4572_s24, %s5374_s23, %s5374_s23, %s5383_s3  }
 0x112   : > { %p5384_p8 = scmp.ne.s32.totalorder %s5367_s16, 0 }
 0x113   : > { %s4604_s26 = sand.u32 (!%p5384_p8), 1, %s4204_s10  }
 0x114   : > { %403 = sbr.rel (%p5384_p8) target bundleno = 1191 (0x4a7), region = 56  ;;  %s4607_s5 = sshll.u32 (!%p5384_p8), %s4604_s26, 8 }
 0x115   : > { %s406_s17 = scalar_lea.sflag (!%p5384_p8), [#allocation3], %s4604_s26  ;;  %s4611_s21 = scalar_lea.vmem (!%p5384_p8), [#allocation2], %s4607_s5 }
 0x11b   : > { %4171 = dma.done.wait (%p4503_p7), %s406_s17, 4096  }
 0x11c   : > { %4173 = vsyncadd (%p4503_p7), %s406_s17, 4294963200  ;;  %s414_s16 = sand.u32 1, %s4300_s15   ;;  %s4619_s25 = scalar_lea.vmem [#allocation5], %s4607_s5 }
 0x11d   : > { %s415_s23 = scalar_lea.sflag [#allocation6], %s414_s16 }
 0x11e   : > { %4175 = dma.done.wait (%p4503_p7), %s415_s23, 4096  }
 0x11f   : > { %4177 = vsyncadd (%p4503_p7), %s415_s23, 4294963200  ;;  %p5385_p11 = scmp.eq.s32.totalorder %s4300_s15, 0 }
 0x121   : > { %4179 = dma.done.wait (%p5385_p11), [#allocation6], 512   ;;  %p5386_p3 = pmov %p5385_p11 }
 0x123   : > { %4181 = vsyncadd (%p5386_p3), [#allocation6], 4294966784  ;;  %p5387_p12 = pmov %p5386_p3 }
 0x124   : > { %p5388_p1 = pmov %p5386_p3 }
 0x125   : > { %4183 = dma.done.wait (%p5387_p12), [#allocation9], 272  }
 0x126   : > { %4185 = vsyncadd (%p5388_p1), [#allocation9], 4294967024  ;;  %p5389_p13 = pmov %p5388_p1 }
 0x127   : > { %p5390_p0 = pmov %p5388_p1 }
 0x128   : > { %4187 = dma.done.wait (%p5389_p13), [#allocation12], 2064  }
 0x129   : > { %4189 = vsyncadd (%p5390_p0), [#allocation12], 4294965232  ;;  %p5391_p7 = pmov %p5390_p0 }
 0x12a   : > { %p5392_p2 = pmov %p5390_p0 }
 0x12b   : > { %4191 = dma.done.wait (%p5391_p7), [#allocation15], 2064  }
 0x12c   : > { %4193 = vsyncadd (%p5392_p2), [#allocation15], 4294965232  ;;  %vm532_vm0 = vcmask 261120   ;;  %v521_v0 = vld [vmem:[#allocation7] sm:$0xff]  ;;  %v522_v1 = vld [vmem:[#allocation7 + $0x8] sm:$0xff]  ;;  %s4225_s14 = smov 8  }
 0x12d   : > { %v523_v2 = vld [vmem:[#allocation7 + $0x10] sm:$0xff]  ;;  %v3507_v3 = vpack.c.bf16 %v522_v1, %v521_v0  ;;  %v524_v4 = vld [vmem:[#allocation7 + $0x18] sm:$0xff]  ;;  %v489_v5 = vld [vmem:[%s4611_s21] sm:$0xff]  ;;  %vm895_vm1 = vcmask 130048   ;;  %vm1713_vm2 = vcmask 64512   ;;  %s4226_s3 = smov 120  }
 0x12e   : > { %v3511_v6 = vpack.c.bf16 %v524_v4, %v523_v2  ;;  %3247 = vmatprep.mubr.msk.f32.mxu0 %vm532_vm0, %v489_v5  ;;  %v490_v7 = vld [vmem:[%s4611_s21 + $0x8] sm:$0xff]  ;;  %v491_v8 = vld [vmem:[%s4611_s21 + $0x10] sm:$0xff]  ;;  %v492_v9 = vld [vmem:[%s4611_s21 + $0x18] sm:$0xff]  ;;  %s5231_s7 = scalar_lea.vmem [#allocation17], %s4607_s5  ;;  %s3072_s24 = sshll.u32 %s4300_s15, 12 }
 0x12f   : > { %3508 = vmatprep.subr.bf16.mxu0 %v3507_v3  ;;  %v493_v10 = vld [vmem:[%s4611_s21 + $0x20] sm:$0xff]  ;;  %v494_v11 = vld [vmem:[%s4611_s21 + $0x28] sm:$0xff]  ;;  %v495_v12 = vld [vmem:[%s4611_s21 + $0x30] sm:$0xff]  ;;  %s2713_s2 = sshll.u32 %s5231_s7, 4  ;;  %s5395_s18 = sld [smem:[#allocation32_spill]]  ;;  %s5294_s2 = int_to_ptr.vmem [resolvable:$true] %s2713_s2 }
 0x130   : > { %3510 = vmatpush3.bf16.msra.mxu0 %v3507_v3  ;;  %v496_v13 = vld [vmem:[%s4611_s21 + $0x38] sm:$0xff]  ;;  %v497_v14 = vld [vmem:[%s4611_s21 + $0x40] sm:$0xff]  ;;  %v498_v15 = vld [vmem:[%s4611_s21 + $0x48] sm:$0xff]  ;;  %s2700_s9 = scalar_lea.sflag [#allocation4], %s4604_s26  ;;  %s4126_s15 = scalar_lea.vmem %s5294_s2, 4096 }
 0x131   : > { %3512 = vmatprep.subr.bf16.mxu0 %v3511_v6  ;;  %v499_v16 = vld [vmem:[%s4611_s21 + $0x50] sm:$0xff]  ;;  %v500_v17 = vld [vmem:[%s4611_s21 + $0x58] sm:$0xff]  ;;  %v501_v18 = vld [vmem:[%s4611_s21 + $0x60] sm:$0xff]  ;;  %p4127_p6 = scmp.ne.s32.totalorder %s5294_s2, %s4126_s15  ;;  %p5396_p10 = scmp.ne.s32.totalorder %s5379_s13, 0 }
 0x132   : > { %v502_v19 = vld [vmem:[%s4611_s21 + $0x68] sm:$0xff]  ;;  %v503_v20 = vld [vmem:[%s4611_s21 + $0x70] sm:$0xff]  ;;  %v504_v21 = vld [vmem:[%s4611_s21 + $0x78] sm:$0xff]  ;;  %s4227_s28 = smov [#allocation17]  }
 0x133   : > { %v505_v22 = vld [vmem:[%s4611_s21 + $0x80] sm:$0xff]  ;;  %v506_v23 = vld [vmem:[%s4611_s21 + $0x88] sm:$0xff]  ;;  %v507_v24 = vld [vmem:[%s4611_s21 + $0x90] sm:$0xff]  ;;  %p4128_p5 = pnand %p4127_p6, %p5396_p10  ;;  %s4130_s27 = sshll.u32 %s4227_s28, 4  ;;  %s4131_s27 = int_to_ptr.vmem [resolvable:$false] %s4130_s27 }
 0x134   : > { %3514 = vmatpush3.bf16.msra.mxu0 %v3511_v6  ;;  %v508_v25 = vld [vmem:[%s4611_s21 + $0x98] sm:$0xff]  ;;  %v509_v26 = vld [vmem:[%s4611_s21 + $0xa0] sm:$0xff]  ;;  %v510_v27 = vld [vmem:[%s4611_s21 + $0xa8] sm:$0xff]  ;;  %s4132_s0 = scalar_lea.vmem %s4131_s27, 8192  ;;  %p4133_p4 = scmp.lt.s32.totalorder %s5294_s2, %s4131_s27 }
 0x135   : > { %v511_v28 = vld [vmem:[%s4611_s21 + $0xb0] sm:$0xff]  ;;  %v512_v29 = vld [vmem:[%s4611_s21 + $0xb8] sm:$0xff]  ;;  %v513_v30 = vld [vmem:[%s4611_s21 + $0xc0] sm:$0xff]  ;;  %s5292_s6 = scalar_lea.hbm %s5395_s18, %s3072_s24  ;;  %p4129_p9 = pneg %p4128_p5 }
 0x136   : > { %v514_v31 = vld [vmem:[%s4611_s21 + $0xc8] sm:$0xff]  ;;  %v515_v32 = vld [vmem:[%s4611_s21 + $0xd0] sm:$0xff]  ;;  %v516_v33 = vld [vmem:[%s4611_s21 + $0xd8] sm:$0xff]  ;;  %p4134_p8 = scmp.lt.s32.totalorder %s4132_s0, %s4126_s15 }
 0x137   : > { %3248 = vmatmul.mubr.msk.f32.vlgmr.msra.gmra.mrb[0].mxu0 %vm532_vm0, %v490_v7  ;;  %v517_v34 = vld [vmem:[%s4611_s21 + $0xe0] sm:$0xff]  ;;  %v518_v35 = vld [vmem:[%s4611_s21 + $0xe8] sm:$0xff]  ;;  %v519_v36 = vld [vmem:[%s4611_s21 + $0xf0] sm:$0xff] }
 0x138   : > { %3250 = vmatprep.mubr.msk.f32.mxu0 %vm532_vm0, %v491_v8  ;;  %v520_v37 = vld [vmem:[%s4611_s21 + $0xf8] sm:$0xff]  ;;  %v886_v38 = vld [vmem:[#allocation10] sm:$0xff]  ;;  %v887_v39 = vld [vmem:[#allocation10 + $0x8] sm:$0xff]  ;;  %p4135_p11 = por %p4134_p8, %p4133_p4 }
 0x139   : > { %v3515_v40 = vpack.c.bf16 %v887_v39, %v886_v38  ;;  %v1313_v41 = vld [vmem:[%s4619_s25] sm:$0xff]  ;;  %v1315_v42 = vld [vmem:[%s4619_s25 + $0x10] sm:$0xff]  ;;  %v1314_v43 = vld [vmem:[%s4619_s25 + $0x8] sm:$0xff] }
 0x13a   : > { %1377 = vrot.lane.b32.xlu0 %v1313_v41, %s4225_s14  ;;  %1381 = vrot.lane.b32.xlu1 %v1315_v42, %s4225_s14  ;;  %v1316_v44 = vld [vmem:[%s4619_s25 + $0x18] sm:$0xff]  ;;  %v1317_v45 = vld [vmem:[%s4619_s25 + $0x20] sm:$0xff]  ;;  %vm4837_vm3 = vmpackc.low %vm1713_vm2, %vm1713_vm2  ;;  %p4136_p3 = pnand %p4135_p11, %p4129_p9 }
 0x13b   : > { %3251 = vmatmul.mubr.msk.f32.gmra.mrb[2].mxu0 %vm532_vm0, %v492_v9  ;;  %3516 = vmatprep.subr.bf16.mxu1 %v3515_v40  ;;  %v1318_v46 = vld [vmem:[%s4619_s25 + $0x28] sm:$0xff]  ;;  %v1319_v47 = vld [vmem:[%s4619_s25 + $0x30] sm:$0xff]  ;;  %v1320_v48 = vld [vmem:[%s4619_s25 + $0x38] sm:$0xff] }
 0x13c   : > { %3253 = vmatprep.mubr.msk.f32.mxu0 %vm532_vm0, %v493_v10  ;;  %3518 = vmatpush3.bf16.msra.mxu1 %v3515_v40  ;;  %v1321_v49 = vld [vmem:[%s4619_s25 + $0x40] sm:$0xff]  ;;  %v1322_v50 = vld [vmem:[%s4619_s25 + $0x48] sm:$0xff]  ;;  %v1323_v51 = vld [vmem:[%s4619_s25 + $0x50] sm:$0xff] }
 0x13d   : > { %v1324_v52 = vld [vmem:[%s4619_s25 + $0x58] sm:$0xff]  ;;  %v1325_v53 = vld [vmem:[%s4619_s25 + $0x60] sm:$0xff]  ;;  %v1326_v54 = vld [vmem:[%s4619_s25 + $0x68] sm:$0xff] }
 0x13e   : > { %1379 = vrot.lane.b32.xlu0 %v1314_v43, %s4225_s14  ;;  %1383 = vrot.lane.b32.xlu1 %v1316_v44, %s4225_s14  ;;  %v1327_v55 = vld [vmem:[%s4619_s25 + $0x70] sm:$0xff]  ;;  %v1328_v56 = vld [vmem:[%s4619_s25 + $0x78] sm:$0xff]  ;;  %v4766_v8 = vld [vmem:[#allocation8] ss:$0 sm:$0xff] }
 0x13f   : > { %3254 = vmatmul.mubr.msk.f32.gmra.mrb[4].mxu0 %vm532_vm0, %v494_v11  ;;  %v1329_v57 = vld [vmem:[%s4619_s25 + $0x80] sm:$0xff]  ;;  %v1330_v58 = vld [vmem:[%s4619_s25 + $0x88] sm:$0xff]  ;;  %v1331_v59 = vld [vmem:[%s4619_s25 + $0x90] sm:$0xff] }
 0x140   : > { %3256 = vmatprep.mubr.msk.f32.mxu0 %vm532_vm0, %v495_v12  ;;  %v1332_v60 = vld [vmem:[%s4619_s25 + $0x98] sm:$0xff]  ;;  %v1333_v61 = vld [vmem:[%s4619_s25 + $0xa0] sm:$0xff]  ;;  %v1334_v62 = vld [vmem:[%s4619_s25 + $0xa8] sm:$0xff] }
 0x141   : > { %v1335_v63 = vld [vmem:[%s4619_s25 + $0xb0] sm:$0xff]  ;;  %v1336_v0 = vld [vmem:[%s4619_s25 + $0xb8] sm:$0xff]  ;;  %v1337_v1 = vld [vmem:[%s4619_s25 + $0xc0] sm:$0xff] }
 0x142   : > { %1385 = vrot.lane.b32.xlu0 %v1317_v45, %s4225_s14  ;;  %1387 = vrot.lane.b32.xlu1 %v1318_v46, %s4225_s14  ;;  %v1338_v2 = vld [vmem:[%s4619_s25 + $0xc8] sm:$0xff]  ;;  %v1339_v3 = vld [vmem:[%s4619_s25 + $0xd0] sm:$0xff] }
 0x143   : > { %3257 = vmatmul.mubr.msk.f32.gmra.mrb[6].mxu0 %vm532_vm0, %v496_v13  ;;  %v1340_v4 = vld [vmem:[%s4619_s25 + $0xd8] sm:$0xff]  ;;  %v1341_v5 = vld [vmem:[%s4619_s25 + $0xe0] sm:$0xff]  ;;  %v1342_v6 = vld [vmem:[%s4619_s25 + $0xe8] sm:$0xff] }
 0x144   : > { %3259 = vmatprep.mubr.msk.f32.mxu0 %vm532_vm0, %v497_v14  ;;  %v1343_v7 = vld [vmem:[%s4619_s25 + $0xf0] sm:$0xff]  ;;  %v1344_v12 = vld [vmem:[%s4619_s25 + $0xf8] sm:$0xff] }
 0x146   : > { %1389 = vrot.lane.b32.xlu0 %v1319_v47, %s4225_s14  ;;  %1391 = vrot.lane.b32.xlu1 %v1320_v48, %s4225_s14 }
 0x147   : > { %3260 = vmatmul.mubr.msk.f32.gmra.mrb[8].mxu0 %vm532_vm0, %v498_v15 }
 0x148   : > { %3262 = vmatprep.mubr.msk.f32.mxu0 %vm532_vm0, %v499_v16 }
 0x14a   : > { %1393 = vrot.lane.b32.xlu0 %v1321_v49, %s4225_s14  ;;  %1395 = vrot.lane.b32.xlu1 %v1322_v50, %s4225_s14 }
 0x14b   : > { %3263 = vmatmul.mubr.msk.f32.gmra.mrb[10].mxu0 %vm532_vm0, %v500_v17 }
 0x14c   : > { %3265 = vmatprep.mubr.msk.f32.mxu0 %vm532_vm0, %v501_v18 }
 0x14e   : > { %1397 = vrot.lane.b32.xlu0 %v1323_v51, %s4225_s14  ;;  %1399 = vrot.lane.b32.xlu1 %v1324_v52, %s4225_s14 }
 0x14f   : > { %3266 = vmatmul.mubr.msk.f32.gmra.mrb[12].mxu0 %vm532_vm0, %v502_v19 }
 0x150   : > { %3268 = vmatprep.mubr.msk.f32.mxu0 %vm532_vm0, %v503_v20 }
 0x152   : > { %1401 = vrot.lane.b32.xlu0 %v1325_v53, %s4225_s14  ;;  %1403 = vrot.lane.b32.xlu1 %v1326_v54, %s4225_s14 }
 0x153   : > { %3269 = vmatmul.mubr.msk.f32.gmra.mrb[14].mxu0 %vm532_vm0, %v504_v21 }
 0x154   : > { %3271 = vmatprep.mubr.msk.f32.mxu0 %vm532_vm0, %v505_v22 }
 0x156   : > { %1405 = vrot.lane.b32.xlu0 %v1327_v55, %s4225_s14  ;;  %1407 = vrot.lane.b32.xlu1 %v1328_v56, %s4225_s14 }
 0x157   : > { %3272 = vmatmul.mubr.msk.f32.gmra.mrb[16].mxu0 %vm532_vm0, %v506_v23 }
 0x158   : > { %3274 = vmatprep.mubr.msk.f32.mxu0 %vm532_vm0, %v507_v24 }
 0x15a   : > { %1409 = vrot.lane.b32.xlu0 %v1329_v57, %s4225_s14  ;;  %1411 = vrot.lane.b32.xlu1 %v1330_v58, %s4225_s14 }
 0x15b   : > { %3275 = vmatmul.mubr.msk.f32.gmra.mrb[18].mxu0 %vm532_vm0, %v508_v25 }
 0x15c   : > { %3277 = vmatprep.mubr.msk.f32.mxu0 %vm532_vm0, %v509_v26 }
 0x15e   : > { %1413 = vrot.lane.b32.xlu0 %v1331_v59, %s4225_s14  ;;  %1415 = vrot.lane.b32.xlu1 %v1332_v60, %s4225_s14 }
 0x15f   : > { %3278 = vmatmul.mubr.msk.f32.gmra.mrb[20].mxu0 %vm532_vm0, %v510_v27 }
 0x160   : > { %3280 = vmatprep.mubr.msk.f32.mxu0 %vm532_vm0, %v511_v28 }
 0x162   : > { %1417 = vrot.lane.b32.xlu0 %v1333_v61, %s4225_s14  ;;  %1419 = vrot.lane.b32.xlu1 %v1334_v62, %s4225_s14 }
 0x163   : > { %3281 = vmatmul.mubr.msk.f32.gmra.mrb[22].mxu0 %vm532_vm0, %v512_v29 }
 0x164   : > { %3283 = vmatprep.mubr.msk.f32.mxu0 %vm532_vm0, %v513_v30 }
 0x166   : > { %1421 = vrot.lane.b32.xlu0 %v1335_v63, %s4225_s14  ;;  %1423 = vrot.lane.b32.xlu1 %v1336_v0, %s4225_s14 }
 0x167   : > { %3284 = vmatmul.mubr.msk.f32.gmra.mrb[24].mxu0 %vm532_vm0, %v514_v31 }
 0x168   : > { %3286 = vmatprep.mubr.msk.f32.mxu0 %vm532_vm0, %v515_v32 }
 0x16a   : > { %1425 = vrot.lane.b32.xlu0 %v1337_v1, %s4225_s14  ;;  %1427 = vrot.lane.b32.xlu1 %v1338_v2, %s4225_s14 }
 0x16b   : > { %3287 = vmatmul.mubr.msk.f32.gmra.mrb[26].mxu0 %vm532_vm0, %v516_v33 }
 0x16c   : > { %3289 = vmatprep.mubr.msk.f32.mxu0 %vm532_vm0, %v517_v34 }
 0x16e   : > { %1429 = vrot.lane.b32.xlu0 %v1339_v3, %s4225_s14  ;;  %1431 = vrot.lane.b32.xlu1 %v1340_v4, %s4225_s14 }
 0x16f   : > { %3290 = vmatmul.mubr.msk.f32.gmra.mrb[28].mxu0 %vm532_vm0, %v518_v35 }
 0x170   : > { %3292 = vmatprep.mubr.msk.f32.mxu0 %vm532_vm0, %v519_v36 }
 0x172   : > { %1433 = vrot.lane.b32.xlu0 %v1341_v5, %s4225_s14  ;;  %1435 = vrot.lane.b32.xlu1 %v1342_v6, %s4225_s14 }
 0x173   : > { %3293 = vmatmul.mubr.msk.f32.gmra.mrb[30].mxu0 %vm532_vm0, %v520_v37 }
 0x176   : > { %1437 = vrot.lane.b32.xlu0 %v1343_v7, %s4225_s14 }
 0x17a   : > { %1439 = vrot.lane.b32.xlu0 %v1344_v12, %s4225_s14 }
 0x20a   : > { %v3249_v9 = vpop.f32.mrb[0].mxu0 }
 0x20b   : > { %v701_v10 = vadd.f32 %v3249_v9, %v4766_v8  ;;  %v695_v11 = vpop.f32.mrb[1].mxu0 }
 0x20c   : > { %v696_v13 = vadd.f32 %v4766_v8, %v695_v11 }
 0x20d   : > { %v855_v16 = vmax.f32 %v701_v10, 0.0 }
 0x20e   : > { %v854_v14 = vmax.f32 %v696_v13, 0.0  ;;  %v3252_v15 = vpop.f32.mrb[2].mxu0 }
 0x20f   : > { %v711_v17 = vadd.f32 %v3252_v15, %v4766_v8  ;;  %v705_v18 = vpop.f32.mrb[3].mxu0 }
 0x210   : > { %v706_v19 = vadd.f32 %v4766_v8, %v705_v18  ;;  %3299 = vmatprep.mubr.msk.f32.mxu1 %vm895_vm1, %v854_v14 }
 0x211   : > { %v857_v20 = vmax.f32 %v711_v17, 0.0  ;;  %3300 = vmatmul.mubr.msk.f32.vlgmr.msra.gmra.mrb[0].mxu1 %vm895_vm1, %v855_v16 }
 0x212   : > { %v856_v21 = vmax.f32 %v706_v19, 0.0  ;;  %v3255_v22 = vpop.f32.mrb[4].mxu0 }
 0x213   : > { %v721_v23 = vadd.f32 %v3255_v22, %v4766_v8  ;;  %v715_v24 = vpop.f32.mrb[5].mxu0 }
 0x214   : > { %v716_v25 = vadd.f32 %v4766_v8, %v715_v24  ;;  %3302 = vmatprep.mubr.msk.f32.mxu1 %vm895_vm1, %v856_v21 }
 0x215   : > { %v859_v26 = vmax.f32 %v721_v23, 0.0  ;;  %3303 = vmatmul.mubr.msk.f32.gmra.mrb[2].mxu1 %vm895_vm1, %v857_v20 }
 0x216   : > { %v858_v27 = vmax.f32 %v716_v25, 0.0  ;;  %v3258_v28 = vpop.f32.mrb[6].mxu0 }
 0x217   : > { %v731_v29 = vadd.f32 %v3258_v28, %v4766_v8  ;;  %v725_v30 = vpop.f32.mrb[7].mxu0 }
 0x218   : > { %v726_v31 = vadd.f32 %v4766_v8, %v725_v30  ;;  %3305 = vmatprep.mubr.msk.f32.mxu1 %vm895_vm1, %v858_v27 }
 0x219   : > { %v861_v32 = vmax.f32 %v731_v29, 0.0  ;;  %3306 = vmatmul.mubr.msk.f32.gmra.mrb[4].mxu1 %vm895_vm1, %v859_v26 }
 0x21a   : > { %v860_v33 = vmax.f32 %v726_v31, 0.0  ;;  %v3261_v34 = vpop.f32.mrb[8].mxu0 }
 0x21b   : > { %v741_v35 = vadd.f32 %v3261_v34, %v4766_v8  ;;  %v735_v36 = vpop.f32.mrb[9].mxu0 }
 0x21c   : > { %v736_v37 = vadd.f32 %v4766_v8, %v735_v36  ;;  %3308 = vmatprep.mubr.msk.f32.mxu1 %vm895_vm1, %v860_v33 }
 0x21d   : > { %v863_v38 = vmax.f32 %v741_v35, 0.0  ;;  %3309 = vmatmul.mubr.msk.f32.gmra.mrb[6].mxu1 %vm895_vm1, %v861_v32 }
 0x21e   : > { %v862_v39 = vmax.f32 %v736_v37, 0.0  ;;  %v3264_v40 = vpop.f32.mrb[10].mxu0 }
 0x21f   : > { %v751_v41 = vadd.f32 %v3264_v40, %v4766_v8  ;;  %v745_v42 = vpop.f32.mrb[11].mxu0 }
 0x220   : > { %v746_v43 = vadd.f32 %v4766_v8, %v745_v42  ;;  %3311 = vmatprep.mubr.msk.f32.mxu1 %vm895_vm1, %v862_v39 }
 0x221   : > { %v865_v44 = vmax.f32 %v751_v41, 0.0  ;;  %3312 = vmatmul.mubr.msk.f32.gmra.mrb[8].mxu1 %vm895_vm1, %v863_v38 }
 0x222   : > { %v864_v45 = vmax.f32 %v746_v43, 0.0  ;;  %v3267_v46 = vpop.f32.mrb[12].mxu0  ;;  %v2083_v43 = vld [vmem:[#allocation14] sm:$0xff] }
 0x223   : > { %v761_v47 = vadd.f32 %v3267_v46, %v4766_v8  ;;  %v755_v48 = vpop.f32.mrb[13].mxu0 }
 0x224   : > { %v756_v49 = vadd.f32 %v4766_v8, %v755_v48  ;;  %3314 = vmatprep.mubr.msk.f32.mxu1 %vm895_vm1, %v864_v45 }
 0x225   : > { %v867_v50 = vmax.f32 %v761_v47, 0.0  ;;  %3315 = vmatmul.mubr.msk.f32.gmra.mrb[10].mxu1 %vm895_vm1, %v865_v44  ;;  %v2084_v44 = vld [vmem:[#allocation14 + $0x8] sm:$0xff] }
 0x226   : > { %v866_v51 = vmax.f32 %v756_v49, 0.0  ;;  %v3270_v52 = vpop.f32.mrb[14].mxu0  ;;  %v3567_v45 = vpack.c.bf16 %v2084_v44, %v2083_v43  ;;  %v1698_v47 = vld [vmem:[#allocation13 + $0x8] sm:$0xff]  ;;  %v2085_v49 = vld [vmem:[#allocation14 + $0x10] sm:$0xff] }
 0x227   : > { %v771_v53 = vadd.f32 %v3270_v52, %v4766_v8  ;;  %v765_v54 = vpop.f32.mrb[15].mxu0  ;;  %v1699_v52 = vld [vmem:[#allocation13 + $0x10] sm:$0xff] }
 0x228   : > { %v766_v55 = vadd.f32 %v4766_v8, %v765_v54  ;;  %3317 = vmatprep.mubr.msk.f32.mxu1 %vm895_vm1, %v866_v51  ;;  %3569 = vmatprep.subr.msk.bf16.mxu0 %vm4837_vm3, %v3567_v45  ;;  %v2087_v54 = vld [vmem:[#allocation14 + $0x20] sm:$0xff] }
 0x229   : > { %v869_v56 = vmax.f32 %v771_v53, 0.0  ;;  %3318 = vmatmul.mubr.msk.f32.gmra.mrb[12].mxu1 %vm895_vm1, %v867_v50  ;;  %3572 = vmatpush3.bf16.xpose.msk.msra.mxu0 %vm4837_vm3, %v3567_v45  ;;  %v2086_v50 = vld [vmem:[#allocation14 + $0x18] sm:$0xff] }
 0x22a   : > { %v868_v57 = vmax.f32 %v766_v55, 0.0  ;;  %v3273_v58 = vpop.f32.mrb[16].mxu0  ;;  %v3573_v51 = vpack.c.bf16 %v2086_v50, %v2085_v49  ;;  %v1700_v53 = vld [vmem:[#allocation13 + $0x18] sm:$0xff] }
 0x22b   : > { %v781_v59 = vadd.f32 %v3273_v58, %v4766_v8  ;;  %v775_v60 = vpop.f32.mrb[17].mxu0  ;;  %v3525_v55 = vpack.c.bf16 %v1700_v53, %v1699_v52  ;;  %v1702_v58 = vld [vmem:[#allocation13 + $0x28] sm:$0xff] }
 0x22c   : > { %v776_v61 = vadd.f32 %v4766_v8, %v775_v60  ;;  %3320 = vmatprep.mubr.msk.f32.mxu1 %vm895_vm1, %v868_v57  ;;  %3575 = vmatprep.subr.msk.bf16.mxu0 %vm4837_vm3, %v3573_v51  ;;  %v1701_v57 = vld [vmem:[#allocation13 + $0x20] sm:$0xff] }
 0x22d   : > { %v871_v62 = vmax.f32 %v781_v59, 0.0  ;;  %3321 = vmatmul.mubr.msk.f32.gmra.mrb[14].mxu1 %vm895_vm1, %v869_v56  ;;  %v2088_v56 = vld [vmem:[#allocation14 + $0x28] sm:$0xff]  ;;  %v3531_v60 = vpack.c.bf16 %v1702_v58, %v1701_v57 }
 0x22e   : > { %v870_v63 = vmax.f32 %v776_v61, 0.0  ;;  %v3276_v0 = vpop.f32.mrb[18].mxu0  ;;  %v3579_v59 = vpack.c.bf16 %v2088_v56, %v2087_v54  ;;  %v2089_v61 = vld [vmem:[#allocation14 + $0x30] sm:$0xff] }
 0x22f   : > { %v791_v1 = vadd.f32 %v3276_v0, %v4766_v8  ;;  %v785_v2 = vpop.f32.mrb[19].mxu0  ;;  %v1704_v0 = vld [vmem:[#allocation13 + $0x38] sm:$0xff] }
 0x230   : > { %v786_v3 = vadd.f32 %v4766_v8, %v785_v2  ;;  %3323 = vmatprep.mubr.msk.f32.mxu1 %vm895_vm1, %v870_v63  ;;  %v1703_v63 = vld [vmem:[#allocation13 + $0x30] sm:$0xff] }
 0x231   : > { %v873_v4 = vmax.f32 %v791_v1, 0.0  ;;  %3324 = vmatmul.mubr.msk.f32.gmra.mrb[16].mxu1 %vm895_vm1, %v871_v62  ;;  %3578 = vmatpush3.bf16.xpose.msk.msra.mxu0 %vm4837_vm3, %v3573_v51  ;;  %v2090_v62 = vld [vmem:[#allocation14 + $0x38] sm:$0xff]  ;;  %v3537_v2 = vpack.c.bf16 %v1704_v0, %v1703_v63 }
 0x232   : > { %v872_v5 = vmax.f32 %v786_v3, 0.0  ;;  %v3279_v6 = vpop.f32.mrb[20].mxu0  ;;  %3581 = vmatprep.subr.msk.bf16.mxu0 %vm4837_vm3, %v3579_v59  ;;  %v3585_v1 = vpack.c.bf16 %v2090_v62, %v2089_v61  ;;  %v2091_v3 = vld [vmem:[#allocation14 + $0x40] sm:$0xff] }
 0x233   : > { %v801_v7 = vadd.f32 %v3279_v6, %v4766_v8  ;;  %v795_v9 = vpop.f32.mrb[21].mxu0  ;;  %v1706_v6 = vld [vmem:[#allocation13 + $0x48] sm:$0xff] }
 0x234   : > { %v796_v10 = vadd.f32 %v4766_v8, %v795_v9  ;;  %3326 = vmatprep.mubr.msk.f32.mxu1 %vm895_vm1, %v872_v5  ;;  %v1705_v5 = vld [vmem:[#allocation13 + $0x40] sm:$0xff] }
 0x235   : > { %v875_v11 = vmax.f32 %v801_v7, 0.0  ;;  %3327 = vmatmul.mubr.msk.f32.gmra.mrb[18].mxu1 %vm895_vm1, %v873_v4  ;;  %v2092_v4 = vld [vmem:[#allocation14 + $0x48] sm:$0xff]  ;;  %v3543_v9 = vpack.c.bf16 %v1706_v6, %v1705_v5 }
 0x236   : > { %v874_v12 = vmax.f32 %v796_v10, 0.0  ;;  %v3282_v13 = vpop.f32.mrb[22].mxu0  ;;  %v3591_v7 = vpack.c.bf16 %v2092_v4, %v2091_v3  ;;  %v2093_v10 = vld [vmem:[#allocation14 + $0x50] sm:$0xff] }
 0x237   : > { %v811_v14 = vadd.f32 %v3282_v13, %v4766_v8  ;;  %v805_v15 = vpop.f32.mrb[23].mxu0  ;;  %v1708_v13 = vld [vmem:[#allocation13 + $0x58] sm:$0xff] }
 0x238   : > { %v806_v16 = vadd.f32 %v4766_v8, %v805_v15  ;;  %3329 = vmatprep.mubr.msk.f32.mxu1 %vm895_vm1, %v874_v12  ;;  %v1707_v12 = vld [vmem:[#allocation13 + $0x50] sm:$0xff] }
 0x239   : > { %v877_v17 = vmax.f32 %v811_v14, 0.0  ;;  %3330 = vmatmul.mubr.msk.f32.gmra.mrb[20].mxu1 %vm895_vm1, %v875_v11  ;;  %3584 = vmatpush3.bf16.xpose.msk.msra.mxu0 %vm4837_vm3, %v3579_v59  ;;  %v2094_v11 = vld [vmem:[#allocation14 + $0x58] sm:$0xff]  ;;  %v3549_v15 = vpack.c.bf16 %v1708_v13, %v1707_v12 }
 0x23a   : > { %v876_v18 = vmax.f32 %v806_v16, 0.0  ;;  %v3285_v19 = vpop.f32.mrb[24].mxu0  ;;  %3587 = vmatprep.subr.msk.bf16.mxu0 %vm4837_vm3, %v3585_v1  ;;  %v3597_v14 = vpack.c.bf16 %v2094_v11, %v2093_v10  ;;  %v4879_v16 = vpop.permute.xlu0 %1377 }
 0x23b   : > { %v821_v20 = vadd.f32 %v3285_v19, %v4766_v8  ;;  %v815_v21 = vpop.f32.mrb[25].mxu0  ;;  %v1709_v19 = vld [vmem:[#allocation13 + $0x60] sm:$0xff] }
 0x23c   : > { %v816_v22 = vadd.f32 %v4766_v8, %v815_v21  ;;  %3332 = vmatprep.mubr.msk.f32.mxu1 %vm895_vm1, %v876_v18  ;;  %v2096_v18 = vld [vmem:[#allocation14 + $0x68] sm:$0xff] }
 0x23d   : > { %v879_v23 = vmax.f32 %v821_v20, 0.0  ;;  %3333 = vmatmul.mubr.msk.f32.gmra.mrb[22].mxu1 %vm895_vm1, %v877_v17  ;;  %v2095_v17 = vld [vmem:[#allocation14 + $0x60] sm:$0xff]  ;;  %v1710_v20 = vld [vmem:[#allocation13 + $0x68] sm:$0xff] }
 0x23e   : > { %v878_v24 = vmax.f32 %v816_v22, 0.0  ;;  %v3288_v25 = vpop.f32.mrb[26].mxu0  ;;  %v3603_v21 = vpack.c.bf16 %v2096_v18, %v2095_v17  ;;  %v4887_v22 = vpop.permute.xlu0 %1379 }
 0x23f   : > { %v831_v26 = vadd.f32 %v3288_v25, %v4766_v8  ;;  %v825_v27 = vpop.f32.mrb[27].mxu0  ;;  %v2097_v25 = vld [vmem:[#allocation14 + $0x70] sm:$0xff] }
 0x240   : > { %v826_v28 = vadd.f32 %v4766_v8, %v825_v27  ;;  %3335 = vmatprep.mubr.msk.f32.mxu1 %vm895_vm1, %v878_v24  ;;  %v4891_v24 = vpop.permute.xlu1 %1381  ;;  %v1711_v27 = vld [vmem:[#allocation13 + $0x70] sm:$0xff] }
 0x241   : > { %v881_v29 = vmax.f32 %v831_v26, 0.0  ;;  %3336 = vmatmul.mubr.msk.f32.gmra.mrb[24].mxu1 %vm895_vm1, %v879_v23  ;;  %3590 = vmatpush3.bf16.xpose.msk.msra.mxu0 %vm4837_vm3, %v3585_v1  ;;  %v3555_v23 = vpack.c.bf16 %v1710_v20, %v1709_v19  ;;  %v2098_v26 = vld [vmem:[#allocation14 + $0x78] sm:$0xff] }
 0x242   : > { %v880_v30 = vmax.f32 %v826_v28, 0.0  ;;  %v3291_v31 = vpop.f32.mrb[28].mxu0  ;;  %3593 = vmatprep.subr.msk.bf16.mxu0 %vm4837_vm3, %v3591_v7  ;;  %v1712_v28 = vld [vmem:[#allocation13 + $0x78] sm:$0xff] }
 0x243   : > { %v841_v32 = vadd.f32 %v3291_v31, %v4766_v8  ;;  %v835_v33 = vpop.f32.mrb[29].mxu0  ;;  %v4901_v31 = vld [vmem:[#allocation11] ss:$0 sm:$0xff] }
 0x244   : > { %v836_v34 = vadd.f32 %v4766_v8, %v835_v33  ;;  %3338 = vmatprep.mubr.msk.f32.mxu1 %vm895_vm1, %v880_v30  ;;  %v3609_v30 = vpack.c.bf16 %v2098_v26, %v2097_v25  ;;  %v3561_v33 = vpack.c.bf16 %v1712_v28, %v1711_v27 }
 0x245   : > { %v883_v35 = vmax.f32 %v841_v32, 0.0  ;;  %3339 = vmatmul.mubr.msk.f32.gmra.mrb[26].mxu1 %vm895_vm1, %v881_v29  ;;  %v4899_v29 = vpop.permute.xlu0 %1385  ;;  %v4903_v32 = vpop.permute.xlu1 %1383 }
 0x246   : > { %v882_v36 = vmax.f32 %v836_v34, 0.0  ;;  %v3294_v37 = vpop.f32.mrb[30].mxu0 }
 0x247   : > { %v851_v38 = vadd.f32 %v3294_v37, %v4766_v8  ;;  %v845_v39 = vpop.f32.mrb[31].mxu0 }
 0x248   : > { %v846_v40 = vadd.f32 %v4766_v8, %v845_v39  ;;  %3341 = vmatprep.mubr.msk.f32.mxu1 %vm895_vm1, %v882_v36  ;;  %v1697_v8 = vld [vmem:[#allocation13] sm:$0xff] }
 0x249   : > { %v885_v41 = vmax.f32 %v851_v38, 0.0  ;;  %3342 = vmatmul.mubr.msk.f32.gmra.mrb[28].mxu1 %vm895_vm1, %v883_v35  ;;  %v3519_v48 = vpack.c.bf16 %v1698_v47, %v1697_v8  ;;  %3596 = vmatpush3.bf16.xpose.msk.msra.mxu0 %vm4837_vm3, %v3591_v7  ;;  %v4917_v38 = vpop.permute.xlu0 %1389 }
 0x24a   : > { %v884_v42 = vmax.f32 %v846_v40, 0.0  ;;  %3599 = vmatprep.subr.msk.bf16.mxu0 %vm4837_vm3, %v3597_v14 }
 0x24b   : > { %3521 = vmatprep.subr.msk.bf16.mxu1 %vm4837_vm3, %v3519_v48 }
 0x24c   : > { %3344 = vmatprep.mubr.msk.f32.mxu1 %vm895_vm1, %v884_v42  ;;  %3524 = vmatpush3.bf16.xpose.msk.msra.mxu1 %vm4837_vm3, %v3519_v48  ;;  %v4923_v42 = vpop.permute.xlu1 %1387 }
 0x24d   : > { %3345 = vmatmul.mubr.msk.f32.gmra.mrb[30].mxu1 %vm895_vm1, %v885_v41  ;;  %3527 = vmatprep.subr.msk.bf16.mxu1 %vm4837_vm3, %v3525_v55  ;;  %v4935_v51 = vpop.permute.xlu0 %1393 }
 0x250   : > { %v4945_v57 = vpop.permute.xlu1 %1391 }
 0x251   : > { %3602 = vmatpush3.bf16.xpose.msk.msra.mxu0 %vm4837_vm3, %v3597_v14  ;;  %v4955_v1 = vpop.permute.xlu0 %1397 }
 0x252   : > { %3605 = vmatprep.subr.msk.bf16.mxu0 %vm4837_vm3, %v3603_v21 }
 0x254   : > { %3530 = vmatpush3.bf16.xpose.msk.msra.mxu1 %vm4837_vm3, %v3525_v55  ;;  %v4959_v5 = vpop.permute.xlu1 %1395 }
 0x255   : > { %3533 = vmatprep.subr.msk.bf16.mxu1 %vm4837_vm3, %v3531_v60  ;;  %v4970_v19 = vpop.permute.xlu0 %1401 }
 0x258   : > { %v4979_v27 = vpop.permute.xlu1 %1399 }
 0x259   : > { %3608 = vmatpush3.bf16.xpose.msk.msra.mxu0 %vm4837_vm3, %v3603_v21 }
 0x25a   : > { %3611 = vmatprep.subr.msk.bf16.mxu0 %vm4837_vm3, %v3609_v30 }
 0x25c   : > { %3536 = vmatpush3.bf16.xpose.msk.msra.mxu1 %vm4837_vm3, %v3531_v60 }
 0x25d   : > { %3539 = vmatprep.subr.msk.bf16.mxu1 %vm4837_vm3, %v3537_v2 }
 0x261   : > { %3614 = vmatpush3.bf16.xpose.msk.msra.mxu0 %vm4837_vm3, %v3609_v30 }
 0x264   : > { %3542 = vmatpush3.bf16.xpose.msk.msra.mxu1 %vm4837_vm3, %v3537_v2 }
 0x265   : > { %3545 = vmatprep.subr.msk.bf16.mxu1 %vm4837_vm3, %v3543_v9 }
 0x26c   : > { %3548 = vmatpush3.bf16.xpose.msk.msra.mxu1 %vm4837_vm3, %v3543_v9 }
 0x26d   : > { %3551 = vmatprep.subr.msk.bf16.mxu1 %vm4837_vm3, %v3549_v15 }
 0x274   : > { %3554 = vmatpush3.bf16.xpose.msk.msra.mxu1 %vm4837_vm3, %v3549_v15 }
 0x275   : > { %3557 = vmatprep.subr.msk.bf16.mxu1 %vm4837_vm3, %v3555_v23 }
 0x27c   : > { %3560 = vmatpush3.bf16.xpose.msk.msra.mxu1 %vm4837_vm3, %v3555_v23 }
 0x27d   : > { %3563 = vmatprep.subr.msk.bf16.mxu1 %vm4837_vm3, %v3561_v33 }
 0x284   : > { %3566 = vmatpush3.bf16.xpose.msk.msra.mxu1 %vm4837_vm3, %v3561_v33 }
 0x2e4   : > { %v3301_v34 = vpop.f32.mrb[0].mxu1 }
 0x2e5   : > { %v4910_v35 = vadd.f32 %v3301_v34, %v4901_v31  ;;  %v1058_v36 = vpop.f32.mrb[1].mxu1 }
 0x2e6   : > { %v4915_v37 = vadd.f32 %v4901_v31, %v1058_v36 }
 0x2e7   : > { %v1218_v39 = vmul.f32 0.5, %v4910_v35 }
 0x2e8   : > { %v1217_v40 = vmul.f32 0.5, %v4915_v37  ;;  %v3304_v41 = vpop.f32.mrb[2].mxu1 }
 0x2e9   : > { %v4926_v43 = vadd.f32 %v3304_v41, %v4901_v31  ;;  %v1068_v44 = vpop.f32.mrb[3].mxu1  ;;  %v1251_v45 = vmul.f32 1.442695, %v1218_v39 }
 0x2ea   : > { %v1249_v8 = vmul.f32 1.442695, %v1217_v40  ;;  %v4929_v47 = vadd.f32 %v4901_v31, %v1068_v44 }
 0x2eb   : > { %v1220_v48 = vmul.f32 0.5, %v4926_v43 }
 0x2ec   : > { %3742 = vpow2.f32 %v1249_v8  ;;  %v1219_v49 = vmul.f32 0.5, %v4929_v47  ;;  %v3307_v50 = vpop.f32.mrb[4].mxu1  ;;  %v4993_v8 = vpop.permute.xlu0 %1405 }
 0x2ed   : > { %v4938_v52 = vadd.f32 %v3307_v50, %v4901_v31  ;;  %v1078_v53 = vpop.f32.mrb[5].mxu1  ;;  %3744 = vpow2.f32 %v1251_v45  ;;  %v1255_v54 = vmul.f32 1.442695, %v1220_v48 }
 0x2ee   : > { %v1253_v55 = vmul.f32 1.442695, %v1219_v49  ;;  %v4943_v56 = vadd.f32 %v4901_v31, %v1078_v53 }
 0x2ef   : > { %v1222_v58 = vmul.f32 0.5, %v4938_v52 }
 0x2f0   : > { %3746 = vpow2.f32 %v1253_v55  ;;  %v1221_v59 = vmul.f32 0.5, %v4943_v56  ;;  %v3310_v60 = vpop.f32.mrb[6].mxu1 }
 0x2f1   : > { %v4950_v61 = vadd.f32 %v3310_v60, %v4901_v31  ;;  %v1088_v62 = vpop.f32.mrb[7].mxu1  ;;  %3748 = vpow2.f32 %v1255_v54  ;;  %v1259_v46 = vmul.f32 1.442695, %v1222_v58  ;;  %v4999_v58 = vpop.permute.xlu1 %1403 }
 0x2f2   : > { %v1257_v63 = vmul.f32 1.442695, %v1221_v59  ;;  %v4953_v0 = vadd.f32 %v4901_v31, %v1088_v62 }
 0x2f3   : > { %v1224_v2 = vmul.f32 0.5, %v4950_v61 }
 0x2f4   : > { %3750 = vpow2.f32 %v1257_v63  ;;  %v1223_v3 = vmul.f32 0.5, %v4953_v0  ;;  %v3313_v4 = vpop.f32.mrb[8].mxu1 }
 0x2f5   : > { %v4962_v6 = vadd.f32 %v3313_v4, %v4901_v31  ;;  %v1098_v7 = vpop.f32.mrb[9].mxu1  ;;  %3752 = vpow2.f32 %v1259_v46  ;;  %v1263_v10 = vmul.f32 1.442695, %v1224_v2 }
 0x2f6   : > { %v3743_v9 = vpop.eup %3742  ;;  %v1261_v11 = vmul.f32 1.442695, %v1223_v3  ;;  %v4965_v12 = vadd.f32 %v4901_v31, %v1098_v7 }
 0x2f7   : > { %v1473_v13 = vmul.f32 %v3743_v9, %v4879_v16  ;;  %v1226_v14 = vmul.f32 0.5, %v4962_v6  ;;  %v3745_v15 = vpop.eup %3744 }
 0x2f8   : > { %3754 = vpow2.f32 %v1261_v11  ;;  %v1225_v17 = vmul.f32 0.5, %v4965_v12  ;;  %v3316_v18 = vpop.f32.mrb[10].mxu1  ;;  %v1474_v28 = vmul.f32 %v3745_v15, %v4887_v22 }
 0x2f9   : > { %v4973_v20 = vadd.f32 %v3316_v18, %v4901_v31  ;;  %v1108_v21 = vpop.f32.mrb[11].mxu1  ;;  %1537 = vrot.lane.b32.xlu1 %v1473_v13, %s4226_s3  ;;  %3756 = vpow2.f32 %v1263_v10  ;;  %v1267_v25 = vmul.f32 1.442695, %v1226_v14  ;;  %v5013_v10 = vpop.permute.xlu0 %1409 }
 0x2fa   : > { %v3747_v23 = vpop.eup %3746  ;;  %v1265_v16 = vmul.f32 1.442695, %v1225_v17  ;;  %v4977_v26 = vadd.f32 %v4901_v31, %v1108_v21  ;;  %v5023_v17 = vpop.permute.xlu1 %1407 }
 0x2fb   : > { %v1475_v30 = vmul.f32 %v3747_v23, %v4891_v24  ;;  %v1228_v33 = vmul.f32 0.5, %v4973_v20  ;;  %v3749_v34 = vpop.eup %3748 }
 0x2fc   : > { %3758 = vpow2.f32 %v1265_v16  ;;  %v1227_v36 = vmul.f32 0.5, %v4977_v26  ;;  %v3319_v39 = vpop.f32.mrb[12].mxu1  ;;  %v1476_v48 = vmul.f32 %v3749_v34, %v4903_v32 }
 0x2fd   : > { %v4986_v40 = vadd.f32 %v3319_v39, %v4901_v31  ;;  %v1118_v41 = vpop.f32.mrb[13].mxu1  ;;  %1541 = vrot.lane.b32.xlu0 %v1475_v30, %s4226_s3  ;;  %1539 = vrot.lane.b32.xlu1 %v1474_v28, %s4226_s3  ;;  %3760 = vpow2.f32 %v1267_v25  ;;  %v1271_v22 = vmul.f32 1.442695, %v1228_v33  ;;  %v5037_v39 = vpop.permute.xlu0 %1413 }
 0x2fe   : > { %v3751_v44 = vpop.eup %3750  ;;  %v1269_v45 = vmul.f32 1.442695, %v1227_v36  ;;  %v4991_v24 = vadd.f32 %v4901_v31, %v1118_v41 }
 0x2ff   : > { %v1477_v49 = vmul.f32 %v3751_v44, %v4899_v29  ;;  %v1230_v50 = vmul.f32 0.5, %v4986_v40  ;;  %v3753_v53 = vpop.eup %3752 }
 0x300   : > { %3762 = vpow2.f32 %v1269_v45  ;;  %v1229_v54 = vmul.f32 0.5, %v4991_v24  ;;  %v3322_v55 = vpop.f32.mrb[14].mxu1  ;;  %v1478_v63 = vmul.f32 %v3753_v53, %v4923_v42 }
 0x301   : > { %v5002_v59 = vadd.f32 %v3322_v55, %v4901_v31  ;;  %v1128_v60 = vpop.f32.mrb[15].mxu1  ;;  %1545 = vrot.lane.b32.xlu0 %v1477_v49, %s4226_s3  ;;  %1543 = vrot.lane.b32.xlu1 %v1476_v48, %s4226_s3  ;;  %3764 = vpow2.f32 %v1271_v22  ;;  %v1275_v29 = vmul.f32 1.442695, %v1230_v50  ;;  %v1412_v50 = vpop.permute.xlu1 %1411 }
 0x302   : > { %v3755_v32 = vpop.eup %3754  ;;  %v1273_v62 = vmul.f32 1.442695, %v1229_v54  ;;  %v5007_v46 = vadd.f32 %v4901_v31, %v1128_v60 }
 0x303   : > { %v1479_v2 = vmul.f32 %v3755_v32, %v4917_v38  ;;  %v1232_v3 = vmul.f32 0.5, %v5002_v59  ;;  %v3757_v4 = vpop.eup %3756 }
 0x304   : > { %3766 = vpow2.f32 %v1273_v62  ;;  %v1231_v7 = vmul.f32 0.5, %v5007_v46  ;;  %v3325_v9 = vpop.f32.mrb[16].mxu1  ;;  %v1480_v18 = vmul.f32 %v3757_v4, %v4945_v57  ;;  %v5055_v4 = vpop.permute.xlu0 %1417 }
 0x305   : > { %v5016_v11 = vadd.f32 %v3325_v9, %v4901_v31  ;;  %v1138_v13 = vpop.f32.mrb[17].mxu1  ;;  %1549 = vrot.lane.b32.xlu0 %v1479_v2, %s4226_s3  ;;  %1547 = vrot.lane.b32.xlu1 %v1478_v63, %s4226_s3  ;;  %3768 = vpow2.f32 %v1275_v29  ;;  %v1279_v38 = vmul.f32 1.442695, %v1232_v3 }
 0x306   : > { %v3759_v42 = vpop.eup %3758  ;;  %v1277_v14 = vmul.f32 1.442695, %v1231_v7  ;;  %v5021_v15 = vadd.f32 %v4901_v31, %v1138_v13 }
 0x307   : > { %v1481_v21 = vmul.f32 %v3759_v42, %v4935_v51  ;;  %v1234_v23 = vmul.f32 0.5, %v5016_v11  ;;  %v3761_v25 = vpop.eup %3760 }
 0x308   : > { %3770 = vpow2.f32 %v1277_v14  ;;  %v1233_v16 = vmul.f32 0.5, %v5021_v15  ;;  %v3328_v28 = vpop.f32.mrb[18].mxu1  ;;  %v1482_v41 = vmul.f32 %v3761_v25, %v4959_v5 }
 0x309   : > { %v5030_v30 = vadd.f32 %v3328_v28, %v4901_v31  ;;  %v1148_v33 = vpop.f32.mrb[19].mxu1  ;;  %1553 = vrot.lane.b32.xlu0 %v1481_v21, %s4226_s3  ;;  %1551 = vrot.lane.b32.xlu1 %v1480_v18, %s4226_s3  ;;  %3772 = vpow2.f32 %v1279_v38  ;;  %v1283_v57 = vmul.f32 1.442695, %v1234_v23  ;;  %v1416_v38 = vpop.permute.xlu1 %1415 }
 0x30a   : > { %v3763_v34 = vpop.eup %3762  ;;  %v1281_v36 = vmul.f32 1.442695, %v1233_v16  ;;  %v5035_v51 = vadd.f32 %v4901_v31, %v1148_v33 }
 0x30b   : > { %v1483_v44 = vmul.f32 %v3763_v34, %v4955_v1  ;;  %v1236_v22 = vmul.f32 0.5, %v5030_v30  ;;  %v3765_v45 = vpop.eup %3764 }
 0x30c   : > { %3774 = vpow2.f32 %v1281_v36  ;;  %v1235_v48 = vmul.f32 0.5, %v5035_v51  ;;  %v3331_v49 = vpop.f32.mrb[20].mxu1  ;;  %v1484_v32 = vmul.f32 %v3765_v45, %v4979_v27  ;;  %v1422_v36 = vpop.permute.xlu0 %1421 }
 0x30d   : > { %v5044_v53 = vadd.f32 %v3331_v49, %v4901_v31  ;;  %v1158_v54 = vpop.f32.mrb[21].mxu1  ;;  %1557 = vrot.lane.b32.xlu0 %v1483_v44, %s4226_s3  ;;  %1555 = vrot.lane.b32.xlu1 %v1482_v41, %s4226_s3  ;;  %3776 = vpow2.f32 %v1283_v57  ;;  %v1287_v5 = vmul.f32 1.442695, %v1236_v22 }
 0x30e   : > { %v3767_v55 = vpop.eup %3766  ;;  %v1285_v1 = vmul.f32 1.442695, %v1235_v48  ;;  %v5049_v60 = vadd.f32 %v4901_v31, %v1158_v54  ;;  %v1420_v54 = vpop.permute.xlu1 %1419 }
 0x30f   : > { %v1485_v29 = vmul.f32 %v3767_v55, %v4970_v19  ;;  %v1238_v62 = vmul.f32 0.5, %v5044_v53  ;;  %v3769_v63 = vpop.eup %3768 }
 0x310   : > { %3778 = vpow2.f32 %v1285_v1  ;;  %v1237_v2 = vmul.f32 0.5, %v5049_v60  ;;  %v3334_v3 = vpop.f32.mrb[22].mxu1  ;;  %v1486_v14 = vmul.f32 %v3769_v63, %v4999_v58 }
 0x311   : > { %v5058_v7 = vadd.f32 %v3334_v3, %v4901_v31  ;;  %v1168_v9 = vpop.f32.mrb[23].mxu1  ;;  %1561 = vrot.lane.b32.xlu0 %v1485_v29, %s4226_s3  ;;  %1559 = vrot.lane.b32.xlu1 %v1484_v32, %s4226_s3  ;;  %3780 = vpow2.f32 %v1287_v5  ;;  %v1291_v19 = vmul.f32 1.442695, %v1238_v62 }
 0x312   : > { %v3771_v27 = vpop.eup %3770  ;;  %v1289_v13 = vmul.f32 1.442695, %v1237_v2  ;;  %v5063_v42 = vadd.f32 %v4901_v31, %v1168_v9 }
 0x313   : > { %v1487_v18 = vmul.f32 %v3771_v27, %v4993_v8  ;;  %v1240_v21 = vmul.f32 0.5, %v5058_v7  ;;  %v3773_v23 = vpop.eup %3772  ;;  %v1426_v27 = vpop.permute.xlu0 %1425 }
 0x314   : > { %3782 = vpow2.f32 %v1289_v13  ;;  %v1239_v25 = vmul.f32 0.5, %v5063_v42  ;;  %v3337_v16 = vpop.f32.mrb[24].mxu1  ;;  %v1488_v41 = vmul.f32 %v3773_v23, %v5023_v17 }
 0x315   : > { %v5070_v28 = vadd.f32 %v3337_v16, %v4901_v31  ;;  %v1178_v33 = vpop.f32.mrb[25].mxu1  ;;  %1565 = vrot.lane.b32.xlu0 %v1487_v18, %s4226_s3  ;;  %1563 = vrot.lane.b32.xlu1 %v1486_v14, %s4226_s3  ;;  %3784 = vpow2.f32 %v1291_v19  ;;  %v1295_v58 = vmul.f32 1.442695, %v1240_v21  ;;  %v1424_v21 = vpop.permute.xlu1 %1423 }
 0x316   : > { %v3775_v34 = vpop.eup %3774  ;;  %v1293_v57 = vmul.f32 1.442695, %v1239_v25  ;;  %v5075_v8 = vadd.f32 %v4901_v31, %v1178_v33 }
 0x317   : > { %v1489_v44 = vmul.f32 %v3775_v34, %v5013_v10  ;;  %v1242_v22 = vmul.f32 0.5, %v5070_v28  ;;  %v3777_v45 = vpop.eup %3776 }
 0x318   : > { %3786 = vpow2.f32 %v1293_v57  ;;  %v1241_v48 = vmul.f32 0.5, %v5075_v8  ;;  %v3340_v49 = vpop.f32.mrb[26].mxu1  ;;  %v1490_v29 = vmul.f32 %v3777_v45, %v1412_v50  ;;  %v1430_v45 = vpop.permute.xlu0 %1429 }
 0x319   : > { %v5082_v55 = vadd.f32 %v3340_v49, %v4901_v31  ;;  %v1188_v5 = vpop.f32.mrb[27].mxu1  ;;  %1569 = vrot.lane.b32.xlu0 %v1489_v44, %s4226_s3  ;;  %1567 = vrot.lane.b32.xlu1 %v1488_v41, %s4226_s3  ;;  %3788 = vpow2.f32 %v1295_v58  ;;  %v1299_v17 = vmul.f32 1.442695, %v1242_v22 }
 0x31a   : > { %v3779_v1 = vpop.eup %3778  ;;  %v1297_v10 = vmul.f32 1.442695, %v1241_v48  ;;  %v5087_v32 = vadd.f32 %v4901_v31, %v1188_v5 }
 0x31b   : > { %v1491_v62 = vmul.f32 %v3779_v1, %v5037_v39  ;;  %v1244_v63 = vmul.f32 0.5, %v5082_v55  ;;  %v3781_v2 = vpop.eup %3780 }
 0x31c   : > { %3790 = vpow2.f32 %v1297_v10  ;;  %v1243_v3 = vmul.f32 0.5, %v5087_v32  ;;  %v3343_v9 = vpop.f32.mrb[28].mxu1  ;;  %v1492_v23 = vmul.f32 %v3781_v2, %v1416_v38  ;;  %v1428_v10 = vpop.permute.xlu1 %1427 }
 0x31d   : > { %v5093_v19 = vadd.f32 %v3343_v9, %v4901_v31  ;;  %v1198_v13 = vpop.f32.mrb[29].mxu1  ;;  %1573 = vrot.lane.b32.xlu0 %v1491_v62, %s4226_s3  ;;  %1571 = vrot.lane.b32.xlu1 %v1490_v29, %s4226_s3  ;;  %3792 = vpow2.f32 %v1299_v17  ;;  %v1303_v50 = vmul.f32 1.442695, %v1244_v63 }
 0x31e   : > { %v3783_v14 = vpop.eup %3782  ;;  %v1301_v39 = vmul.f32 1.442695, %v1243_v3  ;;  %v5098_v18 = vadd.f32 %v4901_v31, %v1198_v13 }
 0x31f   : > { %v1493_v25 = vmul.f32 %v3783_v14, %v5055_v4  ;;  %v1246_v16 = vmul.f32 0.5, %v5093_v19  ;;  %v3785_v33 = vpop.eup %3784 }
 0x320   : > { %3794 = vpow2.f32 %v1301_v39  ;;  %v1245_v34 = vmul.f32 0.5, %v5098_v18  ;;  %v3346_v58 = vpop.f32.mrb[30].mxu1  ;;  %v1494_v48 = vmul.f32 %v3785_v33, %v1420_v54  ;;  %v1432_v9 = vpop.permute.xlu1 %1431 }
 0x321   : > { %v5104_v57 = vadd.f32 %v3346_v58, %v4901_v31  ;;  %v1208_v41 = vpop.f32.mrb[31].mxu1  ;;  %1577 = vrot.lane.b32.xlu0 %v1493_v25, %s4226_s3  ;;  %1575 = vrot.lane.b32.xlu1 %v1492_v23, %s4226_s3  ;;  %3796 = vpow2.f32 %v1303_v50  ;;  %v1307_v38 = vmul.f32 1.442695, %v1246_v16 }
 0x322   : > { %v3787_v44 = vpop.eup %3786  ;;  %v1305_v22 = vmul.f32 1.442695, %v1245_v34  ;;  %v5109_v4 = vadd.f32 %v4901_v31, %v1208_v41 }
 0x323   : > { %v1495_v49 = vmul.f32 %v3787_v44, %v1422_v36  ;;  %v1248_v5 = vmul.f32 0.5, %v5104_v57  ;;  %v3789_v1 = vpop.eup %3788  ;;  %v1434_v36 = vpop.permute.xlu0 %1433 }
 0x324   : > { %3798 = vpow2.f32 %v1305_v22  ;;  %v1247_v17 = vmul.f32 0.5, %v5109_v4  ;;  %v1496_v31 = vmul.f32 %v3789_v1, %v1424_v21  ;;  %v1436_v16 = vpop.permute.xlu1 %1435 }
 0x325   : > { %1581 = vrot.lane.b32.xlu0 %v1495_v49, %s4226_s3  ;;  %1579 = vrot.lane.b32.xlu1 %v1494_v48, %s4226_s3  ;;  %3800 = vpow2.f32 %v1307_v38  ;;  %v1311_v62 = vmul.f32 1.442695, %v1248_v5 }
 0x326   : > { %v3791_v29 = vpop.eup %3790  ;;  %v1309_v63 = vmul.f32 1.442695, %v1247_v17 }
 0x327   : > { %v1497_v2 = vmul.f32 %v3791_v29, %v1426_v27  ;;  %v3793_v3 = vpop.eup %3792  ;;  %v1438_v21 = vpop.permute.xlu0 %1437 }
 0x328   : > { %3802 = vpow2.f32 %v1309_v63  ;;  %v1498_v13 = vmul.f32 %v3793_v3, %v1428_v10 }
 0x329   : > { %1585 = vrot.lane.b32.xlu0 %v1497_v2, %s4226_s3  ;;  %1583 = vrot.lane.b32.xlu1 %v1496_v31, %s4226_s3  ;;  %3804 = vpow2.f32 %v1311_v62 }
 0x32a   : > { %v3795_v54 = vpop.eup %3794 }
 0x32b   : > { %v1499_v14 = vmul.f32 %v3795_v54, %v1430_v45  ;;  %v3797_v50 = vpop.eup %3796  ;;  %v1440_v44 = vpop.permute.xlu0 %1439 }
 0x32c   : > { %v1500_v27 = vmul.f32 %v3797_v50, %v1432_v9 }
 0x32d   : > { %1589 = vrot.lane.b32.xlu0 %v1499_v14, %s4226_s3  ;;  %1587 = vrot.lane.b32.xlu1 %v1498_v13, %s4226_s3 }
 0x32e   : > { %v3799_v39 = vpop.eup %3798 }
 0x32f   : > { %v1501_v23 = vmul.f32 %v3799_v39, %v1434_v36  ;;  %v3801_v25 = vpop.eup %3800 }
 0x330   : > { %v1502_v34 = vmul.f32 %v3801_v25, %v1436_v16 }
 0x331   : > { %1593 = vrot.lane.b32.xlu0 %v1501_v23, %s4226_s3  ;;  %1591 = vrot.lane.b32.xlu1 %v1500_v27, %s4226_s3 }
 0x332   : > { %v3803_v33 = vpop.eup %3802 }
 0x333   : > { %v1503_v58 = vmul.f32 %v3803_v33, %v1438_v21  ;;  %v3805_v41 = vpop.eup %3804 }
 0x334   : > { %v1504_v38 = vmul.f32 %v3805_v41, %v1440_v44 }
 0x335   : > { %1597 = vrot.lane.b32.xlu0 %v1503_v58, %s4226_s3  ;;  %1595 = vrot.lane.b32.xlu1 %v1502_v34, %s4226_s3 }
 0x339   : > { %1599 = vrot.lane.b32.xlu1 %v1504_v38, %s4226_s3 }
 0x36b   : > { %v1538_v22 = vpop.permute.xlu1 %1537 }
 0x36c   : > { %v1633_v45 = vadd.f32 %v1538_v22, %v4915_v37 }
 0x36e   : > { %v1665_v48 = vmul.f32 %v1633_v45, %v1633_v45  ;;  %3459 = vmatprep.mubr.msk.f32.mxu0 %vm1713_vm2, %v1633_v45 }
 0x36f   : > { %v1542_v49 = vpop.permute.xlu0 %1541  ;;  %v1540_v5 = vpop.permute.xlu1 %1539 }
 0x370   : > { %v1635_v1 = vadd.f32 %v1542_v49, %v4929_v47  ;;  %v1634_v17 = vadd.f32 %v1540_v5, %v4910_v35  ;;  %3379 = vmatprep.mubr.msk.f32.mxu1 %vm1713_vm2, %v1665_v48 }
 0x372   : > { %v1667_v10 = vmul.f32 %v1635_v1, %v1635_v1  ;;  %v1666_v29 = vmul.f32 %v1634_v17, %v1634_v17  ;;  %3460 = vmatmul.mubr.msk.f32.vlgmr.msra.gmra.mrb[32].mxu0 %vm1713_vm2, %v1634_v17 }
 0x373   : > { %v1546_v62 = vpop.permute.xlu0 %1545  ;;  %3462 = vmatprep.mubr.msk.f32.mxu0 %vm1713_vm2, %v1635_v1  ;;  %v1544_v63 = vpop.permute.xlu1 %1543 }
 0x374   : > { %v1637_v37 = vadd.f32 %v1546_v62, %v4943_v56  ;;  %v1636_v31 = vadd.f32 %v1544_v63, %v4926_v43  ;;  %3380 = vmatmul.mubr.msk.f32.vlgmr.msra.gmra.mrb[32].mxu1 %vm1713_vm2, %v1666_v29 }
 0x375   : > { %3382 = vmatprep.mubr.msk.f32.mxu1 %vm1713_vm2, %v1667_v10 }
 0x376   : > { %v1669_v47 = vmul.f32 %v1637_v37, %v1637_v37  ;;  %v1668_v35 = vmul.f32 %v1636_v31, %v1636_v31  ;;  %3463 = vmatmul.mubr.msk.f32.gmra.mrb[34].mxu0 %vm1713_vm2, %v1636_v31 }
 0x377   : > { %v1550_v2 = vpop.permute.xlu0 %1549  ;;  %3465 = vmatprep.mubr.msk.f32.mxu0 %vm1713_vm2, %v1637_v37  ;;  %v1548_v3 = vpop.permute.xlu1 %1547 }
 0x378   : > { %v1639_v36 = vadd.f32 %v1550_v2, %v4953_v0  ;;  %v1638_v54 = vadd.f32 %v1548_v3, %v4938_v52  ;;  %3383 = vmatmul.mubr.msk.f32.gmra.mrb[34].mxu1 %vm1713_vm2, %v1668_v35 }
 0x379   : > { %3385 = vmatprep.mubr.msk.f32.mxu1 %vm1713_vm2, %v1669_v47 }
 0x37a   : > { %v1671_v43 = vmul.f32 %v1639_v36, %v1639_v36  ;;  %v1670_v56 = vmul.f32 %v1638_v54, %v1638_v54  ;;  %3466 = vmatmul.mubr.msk.f32.gmra.mrb[36].mxu0 %vm1713_vm2, %v1638_v54 }
 0x37b   : > { %v1554_v9 = vpop.permute.xlu0 %1553  ;;  %3468 = vmatprep.mubr.msk.f32.mxu0 %vm1713_vm2, %v1639_v36  ;;  %v1552_v13 = vpop.permute.xlu1 %1551 }
 0x37c   : > { %v1641_v14 = vadd.f32 %v1554_v9, %v4965_v12  ;;  %v1640_v50 = vadd.f32 %v1552_v13, %v4950_v61  ;;  %3386 = vmatmul.mubr.msk.f32.gmra.mrb[36].mxu1 %vm1713_vm2, %v1670_v56 }
 0x37d   : > { %3388 = vmatprep.mubr.msk.f32.mxu1 %vm1713_vm2, %v1671_v43 }
 0x37e   : > { %v1673_v52 = vmul.f32 %v1641_v14, %v1641_v14  ;;  %v1672_v0 = vmul.f32 %v1640_v50, %v1640_v50  ;;  %3469 = vmatmul.mubr.msk.f32.gmra.mrb[38].mxu0 %vm1713_vm2, %v1640_v50 }
 0x37f   : > { %v1558_v39 = vpop.permute.xlu0 %1557  ;;  %3471 = vmatprep.mubr.msk.f32.mxu0 %vm1713_vm2, %v1641_v14  ;;  %v1556_v21 = vpop.permute.xlu1 %1555 }
 0x380   : > { %v1643_v27 = vadd.f32 %v1558_v39, %v4977_v26  ;;  %v1642_v23 = vadd.f32 %v1556_v21, %v4962_v6  ;;  %3389 = vmatmul.mubr.msk.f32.gmra.mrb[38].mxu1 %vm1713_vm2, %v1672_v0 }
 0x381   : > { %3391 = vmatprep.mubr.msk.f32.mxu1 %vm1713_vm2, %v1673_v52 }
 0x382   : > { %v1675_v61 = vmul.f32 %v1643_v27, %v1643_v27  ;;  %v1674_v12 = vmul.f32 %v1642_v23, %v1642_v23  ;;  %3472 = vmatmul.mubr.msk.f32.gmra.mrb[40].mxu0 %vm1713_vm2, %v1642_v23 }
 0x383   : > { %v1562_v25 = vpop.permute.xlu0 %1561  ;;  %3474 = vmatprep.mubr.msk.f32.mxu0 %vm1713_vm2, %v1643_v27  ;;  %v1560_v16 = vpop.permute.xlu1 %1559 }
 0x384   : > { %v1645_v33 = vadd.f32 %v1562_v25, %v4991_v24  ;;  %v1644_v34 = vadd.f32 %v1560_v16, %v4973_v20  ;;  %3392 = vmatmul.mubr.msk.f32.gmra.mrb[40].mxu1 %vm1713_vm2, %v1674_v12 }
 0x385   : > { %3394 = vmatprep.mubr.msk.f32.mxu1 %vm1713_vm2, %v1675_v61 }
 0x386   : > { %v1677_v6 = vmul.f32 %v1645_v33, %v1645_v33  ;;  %v1676_v26 = vmul.f32 %v1644_v34, %v1644_v34  ;;  %3475 = vmatmul.mubr.msk.f32.gmra.mrb[42].mxu0 %vm1713_vm2, %v1644_v34 }
 0x387   : > { %v1566_v58 = vpop.permute.xlu0 %1565  ;;  %3477 = vmatprep.mubr.msk.f32.mxu0 %vm1713_vm2, %v1645_v33  ;;  %v1564_v41 = vpop.permute.xlu1 %1563 }
 0x388   : > { %v1647_v44 = vadd.f32 %v1566_v58, %v5007_v46  ;;  %v1646_v38 = vadd.f32 %v1564_v41, %v4986_v40  ;;  %3395 = vmatmul.mubr.msk.f32.gmra.mrb[42].mxu1 %vm1713_vm2, %v1676_v26  ;;  %v5220_v41 = vld [vmem:[#allocation16] ss:$0 sm:$0xff] }
 0x389   : > { %3397 = vmatprep.mubr.msk.f32.mxu1 %vm1713_vm2, %v1677_v6 }
 0x38a   : > { %v1679_v20 = vmul.f32 %v1647_v44, %v1647_v44  ;;  %v1678_v24 = vmul.f32 %v1646_v38, %v1646_v38  ;;  %3478 = vmatmul.mubr.msk.f32.gmra.mrb[44].mxu0 %vm1713_vm2, %v1646_v38 }
 0x38b   : > { %v1570_v22 = vpop.permute.xlu0 %1569  ;;  %3480 = vmatprep.mubr.msk.f32.mxu0 %vm1713_vm2, %v1647_v44  ;;  %v1568_v45 = vpop.permute.xlu1 %1567 }
 0x38c   : > { %v1649_v48 = vadd.f32 %v1570_v22, %v5021_v15  ;;  %v1648_v49 = vadd.f32 %v1568_v45, %v5002_v59  ;;  %3398 = vmatmul.mubr.msk.f32.gmra.mrb[44].mxu1 %vm1713_vm2, %v1678_v24 }
 0x38d   : > { %3400 = vmatprep.mubr.msk.f32.mxu1 %vm1713_vm2, %v1679_v20 }
 0x38e   : > { %v1681_v40 = vmul.f32 %v1649_v48, %v1649_v48  ;;  %v1680_v46 = vmul.f32 %v1648_v49, %v1648_v49  ;;  %3481 = vmatmul.mubr.msk.f32.gmra.mrb[46].mxu0 %vm1713_vm2, %v1648_v49 }
 0x38f   : > { %v1574_v5 = vpop.permute.xlu0 %1573  ;;  %3483 = vmatprep.mubr.msk.f32.mxu0 %vm1713_vm2, %v1649_v48  ;;  %v1572_v1 = vpop.permute.xlu1 %1571 }
 0x390   : > { %v1651_v17 = vadd.f32 %v1574_v5, %v5035_v51  ;;  %v1650_v10 = vadd.f32 %v1572_v1, %v5016_v11  ;;  %3401 = vmatmul.mubr.msk.f32.gmra.mrb[46].mxu1 %vm1713_vm2, %v1680_v46 }
 0x391   : > { %3403 = vmatprep.mubr.msk.f32.mxu1 %vm1713_vm2, %v1681_v40 }
 0x392   : > { %v1683_v59 = vmul.f32 %v1651_v17, %v1651_v17  ;;  %v1682_v15 = vmul.f32 %v1650_v10, %v1650_v10  ;;  %3484 = vmatmul.mubr.msk.f32.gmra.mrb[48].mxu0 %vm1713_vm2, %v1650_v10 }
 0x393   : > { %v1578_v29 = vpop.permute.xlu0 %1577  ;;  %3486 = vmatprep.mubr.msk.f32.mxu0 %vm1713_vm2, %v1651_v17  ;;  %v1576_v62 = vpop.permute.xlu1 %1575 }
 0x394   : > { %v1653_v63 = vadd.f32 %v1578_v29, %v5049_v60  ;;  %v1652_v37 = vadd.f32 %v1576_v62, %v5030_v30  ;;  %3404 = vmatmul.mubr.msk.f32.gmra.mrb[48].mxu1 %vm1713_vm2, %v1682_v15 }
 0x395   : > { %3406 = vmatprep.mubr.msk.f32.mxu1 %vm1713_vm2, %v1683_v59 }
 0x396   : > { %v1685_v11 = vmul.f32 %v1653_v63, %v1653_v63  ;;  %v1684_v51 = vmul.f32 %v1652_v37, %v1652_v37  ;;  %3487 = vmatmul.mubr.msk.f32.gmra.mrb[50].mxu0 %vm1713_vm2, %v1652_v37 }
 0x397   : > { %v1582_v31 = vpop.permute.xlu0 %1581  ;;  %3489 = vmatprep.mubr.msk.f32.mxu0 %vm1713_vm2, %v1653_v63  ;;  %v1580_v47 = vpop.permute.xlu1 %1579 }
 0x398   : > { %v1655_v35 = vadd.f32 %v1582_v31, %v5063_v42  ;;  %v1654_v2 = vadd.f32 %v1580_v47, %v5044_v53  ;;  %3407 = vmatmul.mubr.msk.f32.gmra.mrb[50].mxu1 %vm1713_vm2, %v1684_v51 }
 0x399   : > { %3409 = vmatprep.mubr.msk.f32.mxu1 %vm1713_vm2, %v1685_v11 }
 0x39a   : > { %v1687_v30 = vmul.f32 %v1655_v35, %v1655_v35  ;;  %v1686_v60 = vmul.f32 %v1654_v2, %v1654_v2  ;;  %3490 = vmatmul.mubr.msk.f32.gmra.mrb[52].mxu0 %vm1713_vm2, %v1654_v2 }
 0x39b   : > { %v1586_v3 = vpop.permute.xlu0 %1585  ;;  %3492 = vmatprep.mubr.msk.f32.mxu0 %vm1713_vm2, %v1655_v35  ;;  %v1584_v36 = vpop.permute.xlu1 %1583 }
 0x39c   : > { %v1657_v54 = vadd.f32 %v1586_v3, %v5075_v8  ;;  %v1656_v43 = vadd.f32 %v1584_v36, %v5058_v7  ;;  %3410 = vmatmul.mubr.msk.f32.gmra.mrb[52].mxu1 %vm1713_vm2, %v1686_v60 }
 0x39d   : > { %3412 = vmatprep.mubr.msk.f32.mxu1 %vm1713_vm2, %v1687_v30 }
 0x39e   : > { %v1689_v53 = vmul.f32 %v1657_v54, %v1657_v54  ;;  %v1688_v42 = vmul.f32 %v1656_v43, %v1656_v43  ;;  %3493 = vmatmul.mubr.msk.f32.gmra.mrb[54].mxu0 %vm1713_vm2, %v1656_v43 }
 0x39f   : > { %v1590_v56 = vpop.permute.xlu0 %1589  ;;  %3495 = vmatprep.mubr.msk.f32.mxu0 %vm1713_vm2, %v1657_v54  ;;  %v1588_v9 = vpop.permute.xlu1 %1587 }
 0x3a0   : > { %v1659_v13 = vadd.f32 %v1590_v56, %v5087_v32  ;;  %v1658_v14 = vadd.f32 %v1588_v9, %v5070_v28  ;;  %3413 = vmatmul.mubr.msk.f32.gmra.mrb[54].mxu1 %vm1713_vm2, %v1688_v42 }
 0x3a1   : > { %3415 = vmatprep.mubr.msk.f32.mxu1 %vm1713_vm2, %v1689_v53 }
 0x3a2   : > { %v1691_v7 = vmul.f32 %v1659_v13, %v1659_v13  ;;  %v1690_v8 = vmul.f32 %v1658_v14, %v1658_v14  ;;  %3496 = vmatmul.mubr.msk.f32.gmra.mrb[56].mxu0 %vm1713_vm2, %v1658_v14 }
 0x3a3   : > { %v1594_v50 = vpop.permute.xlu0 %1593  ;;  %3498 = vmatprep.mubr.msk.f32.mxu0 %vm1713_vm2, %v1659_v13  ;;  %v1592_v52 = vpop.permute.xlu1 %1591 }
 0x3a4   : > { %v1661_v0 = vadd.f32 %v1594_v50, %v5098_v18  ;;  %v1660_v39 = vadd.f32 %v1592_v52, %v5082_v55  ;;  %3416 = vmatmul.mubr.msk.f32.gmra.mrb[56].mxu1 %vm1713_vm2, %v1690_v8 }
 0x3a5   : > { %3418 = vmatprep.mubr.msk.f32.mxu1 %vm1713_vm2, %v1691_v7 }
 0x3a6   : > { %v1693_v28 = vmul.f32 %v1661_v0, %v1661_v0  ;;  %v1692_v32 = vmul.f32 %v1660_v39, %v1660_v39  ;;  %3499 = vmatmul.mubr.msk.f32.gmra.mrb[58].mxu0 %vm1713_vm2, %v1660_v39 }
 0x3a7   : > { %v1598_v21 = vpop.permute.xlu0 %1597  ;;  %3501 = vmatprep.mubr.msk.f32.mxu0 %vm1713_vm2, %v1661_v0  ;;  %v1596_v27 = vpop.permute.xlu1 %1595 }
 0x3a8   : > { %v1663_v23 = vadd.f32 %v1598_v21, %v5109_v4  ;;  %v1662_v61 = vadd.f32 %v1596_v27, %v5093_v19  ;;  %3419 = vmatmul.mubr.msk.f32.gmra.mrb[58].mxu1 %vm1713_vm2, %v1692_v32 }
 0x3a9   : > { %3421 = vmatprep.mubr.msk.f32.mxu1 %vm1713_vm2, %v1693_v28 }
 0x3aa   : > { %v1695_v55 = vmul.f32 %v1663_v23, %v1663_v23  ;;  %v1694_v18 = vmul.f32 %v1662_v61, %v1662_v61  ;;  %3502 = vmatmul.mubr.msk.f32.gmra.mrb[60].mxu0 %vm1713_vm2, %v1662_v61 }
 0x3ab   : > { %3504 = vmatprep.mubr.msk.f32.mxu0 %vm1713_vm2, %v1663_v23  ;;  %v1600_v12 = vpop.permute.xlu1 %1599 }
 0x3ac   : > { %v1664_v25 = vadd.f32 %v1600_v12, %v5104_v57  ;;  %3422 = vmatmul.mubr.msk.f32.gmra.mrb[60].mxu1 %vm1713_vm2, %v1694_v18 }
 0x3ad   : > { %3424 = vmatprep.mubr.msk.f32.mxu1 %vm1713_vm2, %v1695_v55 }
 0x3ae   : > { %v1696_v4 = vmul.f32 %v1664_v25, %v1664_v25  ;;  %3505 = vmatmul.mubr.msk.f32.gmra.mrb[62].mxu0 %vm1713_vm2, %v1664_v25 }
 0x3b0   : > { %3425 = vmatmul.mubr.msk.f32.gmra.mrb[62].mxu1 %vm1713_vm2, %v1696_v4 }
 0x445   : > { %v3461_v19 = vpop.f32.mrb[32].mxu0 }
 0x446   : > { %v2469_v16 = vmul.f32 2.0, %v3461_v19  ;;  %v2309_v33 = vpop.f32.mrb[33].mxu0 }
 0x447   : > { %v2468_v34 = vmul.f32 2.0, %v2309_v33  ;;  %v3381_v6 = vpop.f32.mrb[32].mxu1 }
 0x448   : > { %v2501_v26 = vsub.f32 %v3381_v6, %v2469_v16  ;;  %v1924_v58 = vpop.f32.mrb[33].mxu1 }
 0x449   : > { %v2500_v44 = vsub.f32 %v1924_v58, %v2468_v34  ;;  %v3464_v57 = vpop.f32.mrb[34].mxu0 }
 0x44a   : > { %v2534_v38 = vmul.f32 0.5, %v2501_v26  ;;  %v2471_v20 = vmul.f32 2.0, %v3464_v57  ;;  %v2319_v24 = vpop.f32.mrb[35].mxu0 }
 0x44b   : > { %v2533_v22 = vmul.f32 0.5, %v2500_v44  ;;  %v2470_v45 = vmul.f32 2.0, %v2319_v24  ;;  %v3384_v48 = vpop.f32.mrb[34].mxu1 }
 0x44c   : > { %v2572_v49 = vsub.f32 %v5220_v41, %v2534_v38  ;;  %v2503_v40 = vsub.f32 %v3384_v48, %v2471_v20  ;;  %v1934_v46 = vpop.f32.mrb[35].mxu1 }
 0x44d   : > { %v2571_v5 = vsub.f32 %v5220_v41, %v2533_v22  ;;  %v2502_v1 = vsub.f32 %v1934_v46, %v2470_v45  ;;  %v3467_v17 = vpop.f32.mrb[36].mxu0 }
 0x44e   : > { %v2605_v10 = vmul.f32 1.442695, %v2572_v49  ;;  %v2536_v59 = vmul.f32 0.5, %v2503_v40  ;;  %v2473_v15 = vmul.f32 2.0, %v3467_v17  ;;  %v2329_v29 = vpop.f32.mrb[37].mxu0 }
 0x44f   : > { %v2603_v62 = vmul.f32 1.442695, %v2571_v5  ;;  %v2535_v63 = vmul.f32 0.5, %v2502_v1  ;;  %v2472_v37 = vmul.f32 2.0, %v2329_v29  ;;  %v3387_v11 = vpop.f32.mrb[36].mxu1 }
 0x450   : > { %3806 = vpow2.f32 %v2605_v10  ;;  %v2574_v51 = vsub.f32 %v5220_v41, %v2536_v59  ;;  %v2505_v31 = vsub.f32 %v3387_v11, %v2473_v15  ;;  %v1944_v47 = vpop.f32.mrb[37].mxu1 }
 0x451   : > { %3808 = vpow2.f32 %v2603_v62  ;;  %v2573_v35 = vsub.f32 %v5220_v41, %v2535_v63  ;;  %v2504_v2 = vsub.f32 %v1944_v47, %v2472_v37  ;;  %v3470_v30 = vpop.f32.mrb[38].mxu0 }
 0x452   : > { %v2609_v60 = vmul.f32 1.442695, %v2574_v51  ;;  %v2538_v3 = vmul.f32 0.5, %v2505_v31  ;;  %v2475_v36 = vmul.f32 2.0, %v3470_v30  ;;  %v2339_v54 = vpop.f32.mrb[39].mxu0 }
 0x453   : > { %v2607_v43 = vmul.f32 1.442695, %v2573_v35  ;;  %v2537_v53 = vmul.f32 0.5, %v2504_v2  ;;  %v2474_v42 = vmul.f32 2.0, %v2339_v54  ;;  %v3390_v56 = vpop.f32.mrb[38].mxu1 }
 0x454   : > { %3810 = vpow2.f32 %v2609_v60  ;;  %v2576_v9 = vsub.f32 %v5220_v41, %v2538_v3  ;;  %v2507_v13 = vsub.f32 %v3390_v56, %v2475_v36  ;;  %v1954_v14 = vpop.f32.mrb[39].mxu1 }
 0x455   : > { %3812 = vpow2.f32 %v2607_v43  ;;  %v2575_v7 = vsub.f32 %v5220_v41, %v2537_v53  ;;  %v2506_v8 = vsub.f32 %v1954_v14, %v2474_v42  ;;  %v3473_v50 = vpop.f32.mrb[40].mxu0 }
 0x456   : > { %v2613_v52 = vmul.f32 1.442695, %v2576_v9  ;;  %v2540_v0 = vmul.f32 0.5, %v2507_v13  ;;  %v2477_v39 = vmul.f32 2.0, %v3473_v50  ;;  %v2349_v28 = vpop.f32.mrb[41].mxu0 }
 0x457   : > { %v2611_v32 = vmul.f32 1.442695, %v2575_v7  ;;  %v2539_v21 = vmul.f32 0.5, %v2506_v8  ;;  %v2476_v27 = vmul.f32 2.0, %v2349_v28  ;;  %v3393_v23 = vpop.f32.mrb[40].mxu1 }
 0x458   : > { %3814 = vpow2.f32 %v2613_v52  ;;  %v2578_v61 = vsub.f32 %v5220_v41, %v2540_v0  ;;  %v2509_v55 = vsub.f32 %v3393_v23, %v2477_v39  ;;  %v1964_v18 = vpop.f32.mrb[41].mxu1 }
 0x459   : > { %3816 = vpow2.f32 %v2611_v32  ;;  %v2577_v12 = vsub.f32 %v5220_v41, %v2539_v21  ;;  %v2508_v25 = vsub.f32 %v1964_v18, %v2476_v27  ;;  %v3476_v4 = vpop.f32.mrb[42].mxu0 }
 0x45a   : > { %v3807_v19 = vpop.eup %3806  ;;  %v2617_v16 = vmul.f32 1.442695, %v2578_v61  ;;  %v2542_v33 = vmul.f32 0.5, %v2509_v55  ;;  %v2479_v34 = vmul.f32 2.0, %v3476_v4  ;;  %v2359_v6 = vpop.f32.mrb[43].mxu0 }
 0x45b   : > { %v3809_v26 = vpop.eup %3808  ;;  %2668 = vst [vmem:[%s5231_s7 + $0x8] sm:$0xff] %v3807_v19  ;;  %v2615_v58 = vmul.f32 1.442695, %v2577_v12  ;;  %v2541_v44 = vmul.f32 0.5, %v2508_v25  ;;  %v2478_v57 = vmul.f32 2.0, %v2359_v6  ;;  %v3396_v38 = vpop.f32.mrb[42].mxu1 }
 0x45c   : > { %2667 = vst [vmem:[%s5231_s7] sm:$0xff] %v3809_v26  ;;  %3818 = vpow2.f32 %v2617_v16  ;;  %v2580_v20 = vsub.f32 %v5220_v41, %v2542_v33  ;;  %v2511_v24 = vsub.f32 %v3396_v38, %v2479_v34  ;;  %v1974_v22 = vpop.f32.mrb[43].mxu1 }
 0x45d   : > { %3820 = vpow2.f32 %v2615_v58  ;;  %v2579_v45 = vsub.f32 %v5220_v41, %v2541_v44  ;;  %v2510_v48 = vsub.f32 %v1974_v22, %v2478_v57  ;;  %v3479_v49 = vpop.f32.mrb[44].mxu0 }
 0x45e   : > { %v3811_v40 = vpop.eup %3810  ;;  %v2621_v46 = vmul.f32 1.442695, %v2580_v20  ;;  %v2544_v5 = vmul.f32 0.5, %v2511_v24  ;;  %v2481_v1 = vmul.f32 2.0, %v3479_v49  ;;  %v2369_v17 = vpop.f32.mrb[45].mxu0 }
 0x45f   : > { %v3813_v10 = vpop.eup %3812  ;;  %2670 = vst [vmem:[%s5231_s7 + $0x18] sm:$0xff] %v3811_v40  ;;  %v2619_v59 = vmul.f32 1.442695, %v2579_v45  ;;  %v2543_v15 = vmul.f32 0.5, %v2510_v48  ;;  %v2480_v29 = vmul.f32 2.0, %v2369_v17  ;;  %v3399_v62 = vpop.f32.mrb[44].mxu1 }
 0x460   : > { %2669 = vst [vmem:[%s5231_s7 + $0x10] sm:$0xff] %v3813_v10  ;;  %3822 = vpow2.f32 %v2621_v46  ;;  %v2582_v63 = vsub.f32 %v5220_v41, %v2544_v5  ;;  %v2513_v37 = vsub.f32 %v3399_v62, %v2481_v1  ;;  %v1984_v11 = vpop.f32.mrb[45].mxu1 }
 0x461   : > { %3824 = vpow2.f32 %v2619_v59  ;;  %v2581_v51 = vsub.f32 %v5220_v41, %v2543_v15  ;;  %v2512_v31 = vsub.f32 %v1984_v11, %v2480_v29  ;;  %v3482_v47 = vpop.f32.mrb[46].mxu0 }
 0x462   : > { %v3815_v35 = vpop.eup %3814  ;;  %v2625_v2 = vmul.f32 1.442695, %v2582_v63  ;;  %v2546_v30 = vmul.f32 0.5, %v2513_v37  ;;  %v2483_v60 = vmul.f32 2.0, %v3482_v47  ;;  %v2379_v3 = vpop.f32.mrb[47].mxu0 }
 0x463   : > { %v3817_v36 = vpop.eup %3816  ;;  %2672 = vst [vmem:[%s5231_s7 + $0x28] sm:$0xff] %v3815_v35  ;;  %v2623_v54 = vmul.f32 1.442695, %v2581_v51  ;;  %v2545_v43 = vmul.f32 0.5, %v2512_v31  ;;  %v2482_v53 = vmul.f32 2.0, %v2379_v3  ;;  %v3402_v42 = vpop.f32.mrb[46].mxu1 }
 0x464   : > { %2671 = vst [vmem:[%s5231_s7 + $0x20] sm:$0xff] %v3817_v36  ;;  %3826 = vpow2.f32 %v2625_v2  ;;  %v2584_v56 = vsub.f32 %v5220_v41, %v2546_v30  ;;  %v2515_v9 = vsub.f32 %v3402_v42, %v2483_v60  ;;  %v1994_v13 = vpop.f32.mrb[47].mxu1 }
 0x465   : > { %3828 = vpow2.f32 %v2623_v54  ;;  %v2583_v14 = vsub.f32 %v5220_v41, %v2545_v43  ;;  %v2514_v7 = vsub.f32 %v1994_v13, %v2482_v53  ;;  %v3485_v8 = vpop.f32.mrb[48].mxu0 }
 0x466   : > { %v3819_v50 = vpop.eup %3818  ;;  %v2629_v52 = vmul.f32 1.442695, %v2584_v56  ;;  %v2548_v0 = vmul.f32 0.5, %v2515_v9  ;;  %v2485_v39 = vmul.f32 2.0, %v3485_v8  ;;  %v2389_v28 = vpop.f32.mrb[49].mxu0 }
 0x467   : > { %v3821_v32 = vpop.eup %3820  ;;  %2674 = vst [vmem:[%s5231_s7 + $0x38] sm:$0xff] %v3819_v50  ;;  %v2627_v21 = vmul.f32 1.442695, %v2583_v14  ;;  %v2547_v27 = vmul.f32 0.5, %v2514_v7  ;;  %v2484_v23 = vmul.f32 2.0, %v2389_v28  ;;  %v3405_v61 = vpop.f32.mrb[48].mxu1 }
 0x468   : > { %2673 = vst [vmem:[%s5231_s7 + $0x30] sm:$0xff] %v3821_v32  ;;  %3830 = vpow2.f32 %v2629_v52  ;;  %v2586_v55 = vsub.f32 %v5220_v41, %v2548_v0  ;;  %v2517_v18 = vsub.f32 %v3405_v61, %v2485_v39  ;;  %v2004_v12 = vpop.f32.mrb[49].mxu1 }
 0x469   : > { %3832 = vpow2.f32 %v2627_v21  ;;  %v2585_v25 = vsub.f32 %v5220_v41, %v2547_v27  ;;  %v2516_v4 = vsub.f32 %v2004_v12, %v2484_v23  ;;  %v3488_v19 = vpop.f32.mrb[50].mxu0 }
 0x46a   : > { %v3823_v16 = vpop.eup %3822  ;;  %v2633_v33 = vmul.f32 1.442695, %v2586_v55  ;;  %v2550_v34 = vmul.f32 0.5, %v2517_v18  ;;  %v2487_v6 = vmul.f32 2.0, %v3488_v19  ;;  %v2399_v26 = vpop.f32.mrb[51].mxu0 }
 0x46b   : > { %v3825_v58 = vpop.eup %3824  ;;  %2676 = vst [vmem:[%s5231_s7 + $0x48] sm:$0xff] %v3823_v16  ;;  %v2631_v44 = vmul.f32 1.442695, %v2585_v25  ;;  %v2549_v57 = vmul.f32 0.5, %v2516_v4  ;;  %v2486_v38 = vmul.f32 2.0, %v2399_v26  ;;  %v3408_v20 = vpop.f32.mrb[50].mxu1 }
 0x46c   : > { %2675 = vst [vmem:[%s5231_s7 + $0x40] sm:$0xff] %v3825_v58  ;;  %3834 = vpow2.f32 %v2633_v33  ;;  %v2588_v24 = vsub.f32 %v5220_v41, %v2550_v34  ;;  %v2519_v22 = vsub.f32 %v3408_v20, %v2487_v6  ;;  %v2014_v45 = vpop.f32.mrb[51].mxu1 }
 0x46d   : > { %3836 = vpow2.f32 %v2631_v44  ;;  %v2587_v48 = vsub.f32 %v5220_v41, %v2549_v57  ;;  %v2518_v49 = vsub.f32 %v2014_v45, %v2486_v38  ;;  %v3491_v40 = vpop.f32.mrb[52].mxu0 }
 0x46e   : > { %v3827_v46 = vpop.eup %3826  ;;  %v2637_v5 = vmul.f32 1.442695, %v2588_v24  ;;  %v2552_v1 = vmul.f32 0.5, %v2519_v22  ;;  %v2489_v17 = vmul.f32 2.0, %v3491_v40  ;;  %v2409_v10 = vpop.f32.mrb[53].mxu0 }
 0x46f   : > { %v3829_v59 = vpop.eup %3828  ;;  %2678 = vst [vmem:[%s5231_s7 + $0x58] sm:$0xff] %v3827_v46  ;;  %v2635_v15 = vmul.f32 1.442695, %v2587_v48  ;;  %v2551_v29 = vmul.f32 0.5, %v2518_v49  ;;  %v2488_v62 = vmul.f32 2.0, %v2409_v10  ;;  %v3411_v63 = vpop.f32.mrb[52].mxu1 }
 0x470   : > { %2677 = vst [vmem:[%s5231_s7 + $0x50] sm:$0xff] %v3829_v59  ;;  %3838 = vpow2.f32 %v2637_v5  ;;  %v2590_v37 = vsub.f32 %v5220_v41, %v2552_v1  ;;  %v2521_v11 = vsub.f32 %v3411_v63, %v2489_v17  ;;  %v2024_v51 = vpop.f32.mrb[53].mxu1 }
 0x471   : > { %3840 = vpow2.f32 %v2635_v15  ;;  %v2589_v31 = vsub.f32 %v5220_v41, %v2551_v29  ;;  %v2520_v47 = vsub.f32 %v2024_v51, %v2488_v62  ;;  %v3494_v35 = vpop.f32.mrb[54].mxu0 }
 0x472   : > { %v3831_v2 = vpop.eup %3830  ;;  %v2641_v30 = vmul.f32 1.442695, %v2590_v37  ;;  %v2554_v60 = vmul.f32 0.5, %v2521_v11  ;;  %v2491_v3 = vmul.f32 2.0, %v3494_v35  ;;  %v2419_v36 = vpop.f32.mrb[55].mxu0 }
 0x473   : > { %v3833_v54 = vpop.eup %3832  ;;  %2680 = vst [vmem:[%s5231_s7 + $0x68] sm:$0xff] %v3831_v2  ;;  %v2639_v43 = vmul.f32 1.442695, %v2589_v31  ;;  %v2553_v53 = vmul.f32 0.5, %v2520_v47  ;;  %v2490_v42 = vmul.f32 2.0, %v2419_v36  ;;  %v3414_v56 = vpop.f32.mrb[54].mxu1 }
 0x474   : > { %2679 = vst [vmem:[%s5231_s7 + $0x60] sm:$0xff] %v3833_v54  ;;  %3842 = vpow2.f32 %v2641_v30  ;;  %v2592_v9 = vsub.f32 %v5220_v41, %v2554_v60  ;;  %v2523_v13 = vsub.f32 %v3414_v56, %v2491_v3  ;;  %v2034_v14 = vpop.f32.mrb[55].mxu1 }
 0x475   : > { %3844 = vpow2.f32 %v2639_v43  ;;  %v2591_v7 = vsub.f32 %v5220_v41, %v2553_v53  ;;  %v2522_v8 = vsub.f32 %v2034_v14, %v2490_v42  ;;  %v3497_v50 = vpop.f32.mrb[56].mxu0 }
 0x476   : > { %v3835_v52 = vpop.eup %3834  ;;  %v2645_v0 = vmul.f32 1.442695, %v2592_v9  ;;  %v2556_v39 = vmul.f32 0.5, %v2523_v13  ;;  %v2493_v28 = vmul.f32 2.0, %v3497_v50  ;;  %v2429_v32 = vpop.f32.mrb[57].mxu0 }
 0x477   : > { %v3837_v21 = vpop.eup %3836  ;;  %2682 = vst [vmem:[%s5231_s7 + $0x78] sm:$0xff] %v3835_v52  ;;  %v2643_v27 = vmul.f32 1.442695, %v2591_v7  ;;  %v2555_v23 = vmul.f32 0.5, %v2522_v8  ;;  %v2492_v61 = vmul.f32 2.0, %v2429_v32  ;;  %v3417_v55 = vpop.f32.mrb[56].mxu1 }
 0x478   : > { %2681 = vst [vmem:[%s5231_s7 + $0x70] sm:$0xff] %v3837_v21  ;;  %3846 = vpow2.f32 %v2645_v0  ;;  %v2594_v18 = vsub.f32 %v5220_v41, %v2556_v39  ;;  %v2525_v12 = vsub.f32 %v3417_v55, %v2493_v28  ;;  %v2044_v25 = vpop.f32.mrb[57].mxu1 }
 0x479   : > { %3848 = vpow2.f32 %v2643_v27  ;;  %v2593_v4 = vsub.f32 %v5220_v41, %v2555_v23  ;;  %v2524_v19 = vsub.f32 %v2044_v25, %v2492_v61  ;;  %v3500_v16 = vpop.f32.mrb[58].mxu0 }
 0x47a   : > { %v3839_v33 = vpop.eup %3838  ;;  %v2649_v34 = vmul.f32 1.442695, %v2594_v18  ;;  %v2558_v6 = vmul.f32 0.5, %v2525_v12  ;;  %v2495_v26 = vmul.f32 2.0, %v3500_v16  ;;  %v2439_v58 = vpop.f32.mrb[59].mxu0 }
 0x47b   : > { %v3841_v44 = vpop.eup %3840  ;;  %2684 = vst [vmem:[%s5231_s7 + $0x88] sm:$0xff] %v3839_v33  ;;  %v2647_v57 = vmul.f32 1.442695, %v2593_v4  ;;  %v2557_v38 = vmul.f32 0.5, %v2524_v19  ;;  %v2494_v20 = vmul.f32 2.0, %v2439_v58  ;;  %v3420_v24 = vpop.f32.mrb[58].mxu1 }
 0x47c   : > { %2683 = vst [vmem:[%s5231_s7 + $0x80] sm:$0xff] %v3841_v44  ;;  %3850 = vpow2.f32 %v2649_v34  ;;  %v2596_v22 = vsub.f32 %v5220_v41, %v2558_v6  ;;  %v2527_v45 = vsub.f32 %v3420_v24, %v2495_v26  ;;  %v2054_v48 = vpop.f32.mrb[59].mxu1 }
 0x47d   : > { %3852 = vpow2.f32 %v2647_v57  ;;  %v2595_v49 = vsub.f32 %v5220_v41, %v2557_v38  ;;  %v2526_v40 = vsub.f32 %v2054_v48, %v2494_v20  ;;  %v3503_v46 = vpop.f32.mrb[60].mxu0 }
 0x47e   : > { %v3843_v5 = vpop.eup %3842  ;;  %v2653_v1 = vmul.f32 1.442695, %v2596_v22  ;;  %v2560_v17 = vmul.f32 0.5, %v2527_v45  ;;  %v2497_v10 = vmul.f32 2.0, %v3503_v46  ;;  %v2449_v59 = vpop.f32.mrb[61].mxu0 }
 0x47f   : > { %v3845_v15 = vpop.eup %3844  ;;  %2686 = vst [vmem:[%s5231_s7 + $0x98] sm:$0xff] %v3843_v5  ;;  %v2651_v29 = vmul.f32 1.442695, %v2595_v49  ;;  %v2559_v62 = vmul.f32 0.5, %v2526_v40  ;;  %v2496_v63 = vmul.f32 2.0, %v2449_v59  ;;  %v3423_v37 = vpop.f32.mrb[60].mxu1 }
 0x480   : > { %2685 = vst [vmem:[%s5231_s7 + $0x90] sm:$0xff] %v3845_v15  ;;  %3854 = vpow2.f32 %v2653_v1  ;;  %v2598_v11 = vsub.f32 %v5220_v41, %v2560_v17  ;;  %v2529_v51 = vsub.f32 %v3423_v37, %v2497_v10  ;;  %v2064_v31 = vpop.f32.mrb[61].mxu1 }
 0x481   : > { %3856 = vpow2.f32 %v2651_v29  ;;  %v2597_v47 = vsub.f32 %v5220_v41, %v2559_v62  ;;  %v2528_v35 = vsub.f32 %v2064_v31, %v2496_v63  ;;  %v3506_v2 = vpop.f32.mrb[62].mxu0 }
 0x482   : > { %v3847_v30 = vpop.eup %3846  ;;  %v2657_v60 = vmul.f32 1.442695, %v2598_v11  ;;  %v2562_v3 = vmul.f32 0.5, %v2529_v51  ;;  %v2499_v36 = vmul.f32 2.0, %v3506_v2  ;;  %v2459_v54 = vpop.f32.mrb[63].mxu0 }
 0x483   : > { %v3849_v43 = vpop.eup %3848  ;;  %2688 = vst [vmem:[%s5231_s7 + $0xa8] sm:$0xff] %v3847_v30  ;;  %v2655_v53 = vmul.f32 1.442695, %v2597_v47  ;;  %v2561_v42 = vmul.f32 0.5, %v2528_v35  ;;  %v2498_v56 = vmul.f32 2.0, %v2459_v54  ;;  %v3426_v9 = vpop.f32.mrb[62].mxu1 }
 0x484   : > { %2687 = vst [vmem:[%s5231_s7 + $0xa0] sm:$0xff] %v3849_v43  ;;  %3858 = vpow2.f32 %v2657_v60  ;;  %v2600_v13 = vsub.f32 %v5220_v41, %v2562_v3  ;;  %v2531_v14 = vsub.f32 %v3426_v9, %v2499_v36  ;;  %v2074_v7 = vpop.f32.mrb[63].mxu1 }
 0x485   : > { %3860 = vpow2.f32 %v2655_v53  ;;  %v2599_v8 = vsub.f32 %v5220_v41, %v2561_v42  ;;  %v2530_v50 = vsub.f32 %v2074_v7, %v2498_v56 }
 0x486   : > { %v3851_v52 = vpop.eup %3850  ;;  %v2661_v0 = vmul.f32 1.442695, %v2600_v13  ;;  %v2564_v39 = vmul.f32 0.5, %v2531_v14 }
 0x487   : > { %v3853_v28 = vpop.eup %3852  ;;  %2690 = vst [vmem:[%s5231_s7 + $0xb8] sm:$0xff] %v3851_v52  ;;  %v2659_v32 = vmul.f32 1.442695, %v2599_v8  ;;  %v2563_v21 = vmul.f32 0.5, %v2530_v50 }
 0x488   : > { %2689 = vst [vmem:[%s5231_s7 + $0xb0] sm:$0xff] %v3853_v28  ;;  %3862 = vpow2.f32 %v2661_v0  ;;  %v2602_v27 = vsub.f32 %v5220_v41, %v2564_v39 }
 0x489   : > { %3864 = vpow2.f32 %v2659_v32  ;;  %v2601_v23 = vsub.f32 %v5220_v41, %v2563_v21 }
 0x48a   : > { %v3855_v61 = vpop.eup %3854  ;;  %v2665_v55 = vmul.f32 1.442695, %v2602_v27 }
 0x48b   : > { %v3857_v18 = vpop.eup %3856  ;;  %2692 = vst [vmem:[%s5231_s7 + $0xc8] sm:$0xff] %v3855_v61  ;;  %v2663_v12 = vmul.f32 1.442695, %v2601_v23 }
 0x48c   : > { %2691 = vst [vmem:[%s5231_s7 + $0xc0] sm:$0xff] %v3857_v18  ;;  %3866 = vpow2.f32 %v2665_v55 }
 0x48d   : > { %3868 = vpow2.f32 %v2663_v12 }
 0x48e   : > { %v3859_v25 = vpop.eup %3858 }
 0x48f   : > { %v3861_v4 = vpop.eup %3860  ;;  %2694 = vst [vmem:[%s5231_s7 + $0xd8] sm:$0xff] %v3859_v25 }
 0x490   : > { %2693 = vst [vmem:[%s5231_s7 + $0xd0] sm:$0xff] %v3861_v4 }
 0x492   : > { %v3863_v41 = vpop.eup %3862 }
 0x493   : > { %v3865_v19 = vpop.eup %3864  ;;  %2696 = vst [vmem:[%s5231_s7 + $0xe8] sm:$0xff] %v3863_v41 }
 0x494   : > { %2695 = vst [vmem:[%s5231_s7 + $0xe0] sm:$0xff] %v3865_v19 }
 0x496   : > { %v3867_v16 = vpop.eup %3866 }
 0x497   : > { %v3869_v33 = vpop.eup %3868  ;;  %2698 = vst [vmem:[%s5231_s7 + $0xf8] sm:$0xff] %v3867_v16 }
 0x498   : > { %2697 = vst [vmem:[%s5231_s7 + $0xf0] sm:$0xff] %v3869_v33 }
 0x499   : > { %4139 = shalt.err (!%p4136_p3)
}
 0x49a   : > { %s4140_s5 = scalar_lea.hbm %s5292_s6, 4096  ;;  %s4144_s16 = scalar_lea.hbm %s5395_s18, 8192 }
 0x49b   : > { %p4141_p12 = scmp.ne.s32.totalorder %s5292_s6, %s4140_s5  ;;  %p4145_p0 = scmp.lt.u32.totalorder %s5292_s6, %s5395_s18 }
 0x49c   : > { %p4146_p7 = scmp.lt.u32.totalorder %s4144_s16, %s4140_s5  ;;  %p4148_p6 = scmp.lt.u32.totalorder %s4140_s5, %s5292_s6 }
 0x49d   : > { %p4142_p1 = pnand %p4141_p12, %p5396_p10 }
 0x49e   : > { %p4147_p2 = por %p4146_p7, %p4145_p0 }
 0x49f   : > { %p4143_p13 = pneg %p4142_p1 }
 0x4a0   : > { %p4149_p5 = por %p4148_p6, %p4147_p2 }
 0x4a2   : > { %p4150_p9 = pnand %p4149_p5, %p4143_p13 }
 0x4a4   : > { %4153 = shalt.err (!%p4150_p9)
}
 0x4a5   : > { %s4228_s3 = smov 128  }
 0x4a6   : > { %3647 = dma.vmem_to_hbm [thread:$0]  (%p5396_p10), %s5294_s2, 4096, %s5292_s6, %s2700_s9, %s4228_s3, %s4228_s3, %s4225_s14  }
 0x4a7 PF: > { %s2728_s7 = sand.u32 1, %s4200_s30   ;;  %p5397_p4 = scmp.ne.s32.totalorder %s5380_s22, 0 }
 0x4a8   : > { %p5398_p8 = scmp.ge.s32.totalorder %s4212_s12, 2  ;;  %s2729_s24 = scalar_lea.sflag [#allocation4], %s2728_s7 }
 0x4aa   : > { %p3679_p11 = pnand %p5398_p8, %p5397_p4 }
 0x4ac   : > { %4195 = dma.done.wait (!%p3679_p11), %s2729_s24, 4096  }
 0x4ad   : > { %4197 = vsyncadd (!%p3679_p11), %s2729_s24, 4294963200  ;;  %p28_p3 = scmp.ge.s32.totalorder %s4487_s19, 4   ;;  %s5399_s30 = smov %s4204_s10 }
 0x4ae   : > { %s5400_s10 = smov %s4208_s11  ;;  %s5401_s11 = smov %s4499_s29 }
 0x4af   : > { %s5402_s12 = smov %s4487_s19  ;;  %30 = sbr.rel (!%p28_p3) target bundleno = 19 (0x13), region = 142 }
 0x4b6   :  { %2734 = vsyncpa [#allocation3], 1 }
 0x4b7   :  { %2736 = vsyncpa [#allocation3 + $0x1], 1 }
 0x4b8   :  { %2737 = vsyncpa [#allocation6], 1 }
 0x4b9   :  { %2739 = vsyncpa [#allocation6 + $0x1], 1 }
 0x4ba   :  { %2740 = vsyncpa [#allocation9], 1 }
 0x4bb   :  { %2741 = vsyncpa [#allocation12], 1 }
 0x4bc   :  { %2742 = vsyncpa [#allocation15], 1 }
 0x4bd   :  { %2743 = vsyncpa [#allocation4], 1 }
 0x4be   :  { %2745 = vsyncpa [#allocation4 + $0x1], 1 }

</bundles_post_ra>
